<compile_context>
chip_gen: v6e
topology: v6e:2x2x1
jax: 0.10.0
libtpu: 0.0.40
codegen_flags: <defaults>
</compile_context>

<pallas_src>
import functools

import jax
import jax.numpy as jnp
from jax.experimental import pallas as pl
from jax.experimental.pallas import tpu as pltpu


# ----------------------------------------------------------------------------
# Fused kernel: one batch element per grid step
# ----------------------------------------------------------------------------
def _fused_forward_kernel(*refs, heads_per_layer):
    n_layers = len(heads_per_layer)
    x_ref, wih_ref, whh_ref, brnn_ref = refs[0:4]
    layer_refs = refs[4:4 + 4 * n_layers]
    scores_ref, wlin_ref, blin_ref, out_ref, h_scr, ctx_scr = refs[4 + 4 * n_layers:]

    x = x_ref[0]                       # (T, I)
    T = x.shape[0]
    H = whh_ref.shape[0]

    # ---------------- vanilla RNN, nonlinearity='relu' ----------------
    # Input projection hoisted out of the serial recurrence: one (T, I) @ (I, H) matmul.
    # bias_ih + bias_hh are pre-summed into brnn.
    xw = jnp.dot(x, wih_ref[...], preferred_element_type=jnp.float32) + brnn_ref[...]  # (T, H)
    whh = whh_ref[...]
    h = jnp.zeros((1, H), jnp.float32)
    for t in range(T):                 # static unroll; only h @ Whh remains on the serial path
        h = jnp.maximum(
            xw[t:t + 1, :] + jnp.dot(h, whh, preferred_element_type=jnp.float32), 0.0)
        h_scr[t:t + 1, :] = h          # static-index store into VMEM scratch
    h_seq = h_scr[...]                 # (T, H)

    # ---------------- self-attention layers (+ ReLU) ----------------
    for l, nh in enumerate(heads_per_layer):
        wqkv_ref, bqkv_ref, wo_ref, bo_ref = layer_refs[4 * l:4 * l + 4]
        hd = H // nh
        # Packed QKV projection; the 1/sqrt(hd) scale is folded into Wq/bq at param-prep.
        qkv = (jnp.dot(h_seq, wqkv_ref[...], preferred_element_type=jnp.float32)
               + bqkv_ref[...])        # (T, 3H)
        for hh in range(nh):           # static unroll; each head's output goes straight
            lo, hi = hh * hd, (hh + 1) * hd   # into its column slice (no concatenate)
            q = qkv[:, lo:hi]
            k = qkv[:, H + lo:H + hi]
            v = qkv[:, 2 * H + lo:2 * H + hi]
            s = jnp.dot(q, k.T, preferred_element_type=jnp.float32)    # (T, T), pre-scaled
            s = s - jnp.max(s, axis=-1, keepdims=True)
            p = jnp.exp(s)
            p = p * pl.reciprocal(jnp.sum(p, axis=-1, keepdims=True), approx=True)
            ctx_scr[:, lo:hi] = jnp.dot(p, v, preferred_element_type=jnp.float32)
        h_seq = jnp.maximum(
            jnp.dot(ctx_scr[...], wo_ref[...], preferred_element_type=jnp.float32)
            + bo_ref[...], 0.0)        # ReLU after attention, as in forward()

    # -------- softmax(global_attn_weights) temporal pooling + final Linear --------
    # scores = softmax(global_w) is precomputed at param-prep (does not depend on x).
    pooled = jnp.dot(scores_ref[...], h_seq, preferred_element_type=jnp.float32)   # (1, H)
    out = (jnp.dot(pooled, wlin_ref[...], preferred_element_type=jnp.float32)
           + blin_ref[...])            # (1, O)
    out_ref[0] = out


def _w_spec(shape):
    return pl.BlockSpec(shape, lambda b: (0, 0))


# ----------------------------------------------------------------------------
# Wrapper: single pallas_call for the whole forward pass
# ----------------------------------------------------------------------------
def attention_network_forward(fused, x, *, heads_per_layer):
    B, T, I = x.shape
    H = fused["whh"].shape[0]
    O = fused["wlin"].shape[1]

    inputs = [x, fused["wih"], fused["whh"], fused["brnn"]]
    specs = [pl.BlockSpec((1, T, I), lambda b: (b, 0, 0)),
             _w_spec((I, H)), _w_spec((H, H)), _w_spec((1, H))]
    for wqkv, bqkv, wo, bo in zip(fused["wqkv"], fused["bqkv"], fused["wo"], fused["bo"]):
        inputs += [wqkv, bqkv, wo, bo]
        specs += [_w_spec((H, 3 * H)), _w_spec((1, 3 * H)),
                  _w_spec((H, H)), _w_spec((1, H))]
    inputs += [fused["scores"], fused["wlin"], fused["blin"]]
    specs += [_w_spec((1, T)), _w_spec((H, O)), _w_spec((1, O))]

    kernel = functools.partial(_fused_forward_kernel,
                               heads_per_layer=tuple(heads_per_layer))
    out = pl.pallas_call(
        kernel,
        out_shape=jax.ShapeDtypeStruct((B, 1, O), jnp.float32),
        grid=(B,),
        in_specs=specs,
        out_specs=pl.BlockSpec((1, 1, O), lambda b: (b, 0, 0)),
        scratch_shapes=[pltpu.VMEM((T, H), jnp.float32),   # RNN hidden-state sequence
                        pltpu.VMEM((T, H), jnp.float32)],  # attention context (reused per layer)
        compiler_params=pltpu.CompilerParams(dimension_semantics=("parallel",)),
    )(*inputs)
    return out[:, 0, :]                # (B, O)


# ----------------------------------------------------------------------------
# Deterministic parameter initialization (shapes follow the PyTorch __init__)
# ----------------------------------------------------------------------------
def init_params(key, n_inputs, n_hidden, heads_per_layer, n_outputs, seq_length):
    def uniform(k, shape, fan_in):
        bound = 1.0 / (fan_in ** 0.5)
        return jax.random.uniform(k, shape, jnp.float32, -bound, bound)

    n_layers = len(heads_per_layer)
    keys = iter(jax.random.split(key, 7 + 8 * n_layers))

    params = {
        # RNN: weights stored pre-transposed so the kernel computes x @ W
        "w_ih_t": uniform(next(keys), (n_inputs, n_hidden), n_hidden),
        "w_hh_t": uniform(next(keys), (n_hidden, n_hidden), n_hidden),
        "b_rnn": (uniform(next(keys), (1, n_hidden), n_hidden)
                  + uniform(next(keys), (1, n_hidden), n_hidden)),   # bias_ih + bias_hh
        # global_attn_weights ~ torch.rand(seq_length)
        "global_w": jax.random.uniform(next(keys), (1, seq_length), jnp.float32),
        # final Linear(H, O)
        "w_lin_t": uniform(next(keys), (n_hidden, n_outputs), n_hidden),
        "b_lin": uniform(next(keys), (1, n_outputs), n_hidden),
        "attn_layers": [],
    }
    for nh in heads_per_layer:
        params["attn_layers"].append({
            "wq": uniform(next(keys), (n_hidden, n_hidden), n_hidden),
            "wk": uniform(next(keys), (n_hidden, n_hidden), n_hidden),
            "wv": uniform(next(keys), (n_hidden, n_hidden), n_hidden),
            "bq": uniform(next(keys), (1, n_hidden), n_hidden),
            "bk": uniform(next(keys), (1, n_hidden), n_hidden),
            "bv": uniform(next(keys), (1, n_hidden), n_hidden),
            "wo": uniform(next(keys), (n_hidden, n_hidden), n_hidden),
            "bo": uniform(next(keys), (1, n_hidden), n_hidden),
            "num_heads": nh,
        })
    return params


def prepare_fused_params(params):
    """Pack QKV, fold 1/sqrt(head_dim) into Wq/bq, pre-softmax global pooling weights."""
    H = params["w_hh_t"].shape[0]
    fused = {
        "wih": params["w_ih_t"], "whh": params["w_hh_t"], "brnn": params["b_rnn"],
        "scores": jax.nn.softmax(params["global_w"], axis=-1),
        "wlin": params["w_lin_t"], "blin": params["b_lin"],
        "wqkv": [], "bqkv": [], "wo": [], "bo": [],
    }
    heads = []
    for lyr in params["attn_layers"]:
        nh = lyr["num_heads"]
        scale = 1.0 / float(H // nh) ** 0.5
        fused["wqkv"].append(
            jnp.concatenate([lyr["wq"] * scale, lyr["wk"], lyr["wv"]], axis=1))
        fused["bqkv"].append(
            jnp.concatenate([lyr["bq"] * scale, lyr["bk"], lyr["bv"]], axis=1))
        fused["wo"].append(lyr["wo"])
        fused["bo"].append(lyr["bo"])
        heads.append(nh)
    return fused, tuple(heads)


if __name__ == "__main__":
    # param_dict equivalent: n_inputs=4, n_outputs=3, seq_length=8, params=[32, 4, 2]
    B, T, I, H, O = 2, 8, 4, 32, 3
    heads_per_layer = (4, 2)

    key = jax.random.PRNGKey(0)
    k_x, k_p = jax.random.split(key)
    x = jax.random.normal(k_x, (B, T, I), dtype=jnp.float32)   # (batch, seq, n_inputs)

    params = init_params(k_p, I, H, heads_per_layer, O, T)
    fused, heads = prepare_fused_params(params)

    fwd = jax.jit(functools.partial(attention_network_forward, heads_per_layer=heads))
    out = jax.block_until_ready(fwd(fused, x))
    assert out.shape == (B, O) and out.dtype == jnp.float32
    print("KERNEL_OK")
</pallas_src>

<mosaic_0001>
module attributes {stable_mosaic.version = 11 : i64} {
  func.func @_fused_forward_kernel(%arg0: i32, %arg1: memref<1x8x4xf32, #tpu.memory_space<vmem>>, %arg2: memref<4x32xf32, #tpu.memory_space<vmem>>, %arg3: memref<32x32xf32, #tpu.memory_space<vmem>>, %arg4: memref<1x32xf32, #tpu.memory_space<vmem>>, %arg5: memref<32x96xf32, #tpu.memory_space<vmem>>, %arg6: memref<1x96xf32, #tpu.memory_space<vmem>>, %arg7: memref<32x32xf32, #tpu.memory_space<vmem>>, %arg8: memref<1x32xf32, #tpu.memory_space<vmem>>, %arg9: memref<32x96xf32, #tpu.memory_space<vmem>>, %arg10: memref<1x96xf32, #tpu.memory_space<vmem>>, %arg11: memref<32x32xf32, #tpu.memory_space<vmem>>, %arg12: memref<1x32xf32, #tpu.memory_space<vmem>>, %arg13: memref<1x8xf32, #tpu.memory_space<vmem>>, %arg14: memref<32x3xf32, #tpu.memory_space<vmem>>, %arg15: memref<1x3xf32, #tpu.memory_space<vmem>>, %arg16: memref<1x1x3xf32, #tpu.memory_space<vmem>>, %arg17: memref<8x32xf32, #tpu.memory_space<vmem>>, %arg18: memref<8x32xf32, #tpu.memory_space<vmem>>) attributes {dimension_semantics = [#tpu.dimension_semantics<parallel>], iteration_bounds = array<i64: 2>, scalar_prefetch = 0 : i64, scratch_operands = 2 : i64, tpu.core_type = #tpu.core_type<tc>, window_params = [{transform_indices = @transform_0, window_bounds = array<i64: 1, 8, 4>}, {pipeline_mode = #tpu.pipeline_mode<synchronous>, transform_indices = @transform_1, window_bounds = array<i64: 4, 32>}, {pipeline_mode = #tpu.pipeline_mode<synchronous>, transform_indices = @transform_2, window_bounds = array<i64: 32, 32>}, {pipeline_mode = #tpu.pipeline_mode<synchronous>, transform_indices = @transform_3, window_bounds = array<i64: 1, 32>}, {pipeline_mode = #tpu.pipeline_mode<synchronous>, transform_indices = @transform_4, window_bounds = array<i64: 32, 96>}, {pipeline_mode = #tpu.pipeline_mode<synchronous>, transform_indices = @transform_5, window_bounds = array<i64: 1, 96>}, {pipeline_mode = #tpu.pipeline_mode<synchronous>, transform_indices = @transform_6, window_bounds = array<i64: 32, 32>}, {pipeline_mode = #tpu.pipeline_mode<synchronous>, transform_indices = @transform_7, window_bounds = array<i64: 1, 32>}, {pipeline_mode = #tpu.pipeline_mode<synchronous>, transform_indices = @transform_8, window_bounds = array<i64: 32, 96>}, {pipeline_mode = #tpu.pipeline_mode<synchronous>, transform_indices = @transform_9, window_bounds = array<i64: 1, 96>}, {pipeline_mode = #tpu.pipeline_mode<synchronous>, transform_indices = @transform_10, window_bounds = array<i64: 32, 32>}, {pipeline_mode = #tpu.pipeline_mode<synchronous>, transform_indices = @transform_11, window_bounds = array<i64: 1, 32>}, {pipeline_mode = #tpu.pipeline_mode<synchronous>, transform_indices = @transform_12, window_bounds = array<i64: 1, 8>}, {pipeline_mode = #tpu.pipeline_mode<synchronous>, transform_indices = @transform_13, window_bounds = array<i64: 32, 3>}, {pipeline_mode = #tpu.pipeline_mode<synchronous>, transform_indices = @transform_14, window_bounds = array<i64: 1, 3>}, {transform_indices = @transform_15, window_bounds = array<i64: 1, 1, 3>}]} {
    %c0 = arith.constant 0 : index
    %c0_0 = arith.constant 0 : index
    %c0_1 = arith.constant 0 : index
    %0 = vector.load %arg1[%c0, %c0_0, %c0_1] : memref<1x8x4xf32, #tpu.memory_space<vmem>>, vector<1x8x4xf32>
    %1 = vector.shape_cast %0 : vector<1x8x4xf32> to vector<8x4xf32>
    %c0_2 = arith.constant 0 : index
    %c0_3 = arith.constant 0 : index
    %2 = vector.load %arg2[%c0_2, %c0_3] : memref<4x32xf32, #tpu.memory_space<vmem>>, vector<4x32xf32>
    %cst = arith.constant dense<0.000000e+00> : vector<8x32xf32>
    %3 = tpu.matmul %1, %2, %cst {dimension_numbers = #tpu.dot_dimension_numbers<[1], [0], [0], [1], [0, 0, 1, 1], [], []>} : vector<8x4xf32>, vector<4x32xf32>, vector<8x32xf32> -> vector<8x32xf32>
    %c0_4 = arith.constant 0 : index
    %c0_5 = arith.constant 0 : index
    %4 = vector.load %arg4[%c0_4, %c0_5] : memref<1x32xf32, #tpu.memory_space<vmem>>, vector<1x32xf32>
    %5 = vector.broadcast %4 : vector<1x32xf32> to vector<8x32xf32>
    %6 = arith.addf %3, %5 : vector<8x32xf32>
    %c0_6 = arith.constant 0 : index
    %c0_7 = arith.constant 0 : index
    %7 = vector.load %arg3[%c0_6, %c0_7] : memref<32x32xf32, #tpu.memory_space<vmem>>, vector<32x32xf32>
    %cst_8 = arith.constant 0.000000e+00 : f32
    %8 = vector.broadcast %cst_8 : f32 to vector<1x32xf32>
    %9 = vector.extract_strided_slice %6 {offsets = [0, 0], sizes = [1, 32], strides = [1, 1]} : vector<8x32xf32> to vector<1x32xf32>
    %cst_9 = arith.constant dense<0.000000e+00> : vector<1x32xf32>
    %10 = tpu.matmul %8, %7, %cst_9 {dimension_numbers = #tpu.dot_dimension_numbers<[1], [0], [0], [1], [0, 0, 1, 1], [], []>} : vector<1x32xf32>, vector<32x32xf32>, vector<1x32xf32> -> vector<1x32xf32>
    %11 = arith.addf %9, %10 : vector<1x32xf32>
    %cst_10 = arith.constant 0.000000e+00 : f32
    %12 = vector.broadcast %cst_10 : f32 to vector<1x32xf32>
    %13 = arith.maximumf %11, %12 : vector<1x32xf32>
    %c0_11 = arith.constant 0 : index
    %c0_12 = arith.constant 0 : index
    %14 = vector.load %arg17[%c0_11, %c0_12] : memref<8x32xf32, #tpu.memory_space<vmem>>, vector<1x32xf32>
    tpu.vector_store %arg17[%c0_11, %c0_12], %13 {strides = array<i32>} : memref<8x32xf32, #tpu.memory_space<vmem>>, vector<1x32xf32>,
    %15 = vector.extract_strided_slice %6 {offsets = [1, 0], sizes = [1, 32], strides = [1, 1]} : vector<8x32xf32> to vector<1x32xf32>
    %cst_13 = arith.constant dense<0.000000e+00> : vector<1x32xf32>
    %16 = tpu.matmul %13, %7, %cst_13 {dimension_numbers = #tpu.dot_dimension_numbers<[1], [0], [0], [1], [0, 0, 1, 1], [], []>} : vector<1x32xf32>, vector<32x32xf32>, vector<1x32xf32> -> vector<1x32xf32>
    %17 = arith.addf %15, %16 : vector<1x32xf32>
    %cst_14 = arith.constant 0.000000e+00 : f32
    %18 = vector.broadcast %cst_14 : f32 to vector<1x32xf32>
    %19 = arith.maximumf %17, %18 : vector<1x32xf32>
    %c1 = arith.constant 1 : index
    %c0_15 = arith.constant 0 : index
    %20 = vector.load %arg17[%c1, %c0_15] : memref<8x32xf32, #tpu.memory_space<vmem>>, vector<1x32xf32>
    tpu.vector_store %arg17[%c1, %c0_15], %19 {strides = array<i32>} : memref<8x32xf32, #tpu.memory_space<vmem>>, vector<1x32xf32>,
    %21 = vector.extract_strided_slice %6 {offsets = [2, 0], sizes = [1, 32], strides = [1, 1]} : vector<8x32xf32> to vector<1x32xf32>
    %cst_16 = arith.constant dense<0.000000e+00> : vector<1x32xf32>
    %22 = tpu.matmul %19, %7, %cst_16 {dimension_numbers = #tpu.dot_dimension_numbers<[1], [0], [0], [1], [0, 0, 1, 1], [], []>} : vector<1x32xf32>, vector<32x32xf32>, vector<1x32xf32> -> vector<1x32xf32>
    %23 = arith.addf %21, %22 : vector<1x32xf32>
    %cst_17 = arith.constant 0.000000e+00 : f32
    %24 = vector.broadcast %cst_17 : f32 to vector<1x32xf32>
    %25 = arith.maximumf %23, %24 : vector<1x32xf32>
    %c2 = arith.constant 2 : index
    %c0_18 = arith.constant 0 : index
    %26 = vector.load %arg17[%c2, %c0_18] : memref<8x32xf32, #tpu.memory_space<vmem>>, vector<1x32xf32>
    tpu.vector_store %arg17[%c2, %c0_18], %25 {strides = array<i32>} : memref<8x32xf32, #tpu.memory_space<vmem>>, vector<1x32xf32>,
    %27 = vector.extract_strided_slice %6 {offsets = [3, 0], sizes = [1, 32], strides = [1, 1]} : vector<8x32xf32> to vector<1x32xf32>
    %cst_19 = arith.constant dense<0.000000e+00> : vector<1x32xf32>
    %28 = tpu.matmul %25, %7, %cst_19 {dimension_numbers = #tpu.dot_dimension_numbers<[1], [0], [0], [1], [0, 0, 1, 1], [], []>} : vector<1x32xf32>, vector<32x32xf32>, vector<1x32xf32> -> vector<1x32xf32>
    %29 = arith.addf %27, %28 : vector<1x32xf32>
    %cst_20 = arith.constant 0.000000e+00 : f32
    %30 = vector.broadcast %cst_20 : f32 to vector<1x32xf32>
    %31 = arith.maximumf %29, %30 : vector<1x32xf32>
    %c3 = arith.constant 3 : index
    %c0_21 = arith.constant 0 : index
    %32 = vector.load %arg17[%c3, %c0_21] : memref<8x32xf32, #tpu.memory_space<vmem>>, vector<1x32xf32>
    tpu.vector_store %arg17[%c3, %c0_21], %31 {strides = array<i32>} : memref<8x32xf32, #tpu.memory_space<vmem>>, vector<1x32xf32>,
    %33 = vector.extract_strided_slice %6 {offsets = [4, 0], sizes = [1, 32], strides = [1, 1]} : vector<8x32xf32> to vector<1x32xf32>
    %cst_22 = arith.constant dense<0.000000e+00> : vector<1x32xf32>
    %34 = tpu.matmul %31, %7, %cst_22 {dimension_numbers = #tpu.dot_dimension_numbers<[1], [0], [0], [1], [0, 0, 1, 1], [], []>} : vector<1x32xf32>, vector<32x32xf32>, vector<1x32xf32> -> vector<1x32xf32>
    %35 = arith.addf %33, %34 : vector<1x32xf32>
    %cst_23 = arith.constant 0.000000e+00 : f32
    %36 = vector.broadcast %cst_23 : f32 to vector<1x32xf32>
    %37 = arith.maximumf %35, %36 : vector<1x32xf32>
    %c4 = arith.constant 4 : index
    %c0_24 = arith.constant 0 : index
    %38 = vector.load %arg17[%c4, %c0_24] : memref<8x32xf32, #tpu.memory_space<vmem>>, vector<1x32xf32>
    tpu.vector_store %arg17[%c4, %c0_24], %37 {strides = array<i32>} : memref<8x32xf32, #tpu.memory_space<vmem>>, vector<1x32xf32>,
    %39 = vector.extract_strided_slice %6 {offsets = [5, 0], sizes = [1, 32], strides = [1, 1]} : vector<8x32xf32> to vector<1x32xf32>
    %cst_25 = arith.constant dense<0.000000e+00> : vector<1x32xf32>
    %40 = tpu.matmul %37, %7, %cst_25 {dimension_numbers = #tpu.dot_dimension_numbers<[1], [0], [0], [1], [0, 0, 1, 1], [], []>} : vector<1x32xf32>, vector<32x32xf32>, vector<1x32xf32> -> vector<1x32xf32>
    %41 = arith.addf %39, %40 : vector<1x32xf32>
    %cst_26 = arith.constant 0.000000e+00 : f32
    %42 = vector.broadcast %cst_26 : f32 to vector<1x32xf32>
    %43 = arith.maximumf %41, %42 : vector<1x32xf32>
    %c5 = arith.constant 5 : index
    %c0_27 = arith.constant 0 : index
    %44 = vector.load %arg17[%c5, %c0_27] : memref<8x32xf32, #tpu.memory_space<vmem>>, vector<1x32xf32>
    tpu.vector_store %arg17[%c5, %c0_27], %43 {strides = array<i32>} : memref<8x32xf32, #tpu.memory_space<vmem>>, vector<1x32xf32>,
    %45 = vector.extract_strided_slice %6 {offsets = [6, 0], sizes = [1, 32], strides = [1, 1]} : vector<8x32xf32> to vector<1x32xf32>
    %cst_28 = arith.constant dense<0.000000e+00> : vector<1x32xf32>
    %46 = tpu.matmul %43, %7, %cst_28 {dimension_numbers = #tpu.dot_dimension_numbers<[1], [0], [0], [1], [0, 0, 1, 1], [], []>} : vector<1x32xf32>, vector<32x32xf32>, vector<1x32xf32> -> vector<1x32xf32>
    %47 = arith.addf %45, %46 : vector<1x32xf32>
    %cst_29 = arith.constant 0.000000e+00 : f32
    %48 = vector.broadcast %cst_29 : f32 to vector<1x32xf32>
    %49 = arith.maximumf %47, %48 : vector<1x32xf32>
    %c6 = arith.constant 6 : index
    %c0_30 = arith.constant 0 : index
    %50 = vector.load %arg17[%c6, %c0_30] : memref<8x32xf32, #tpu.memory_space<vmem>>, vector<1x32xf32>
    tpu.vector_store %arg17[%c6, %c0_30], %49 {strides = array<i32>} : memref<8x32xf32, #tpu.memory_space<vmem>>, vector<1x32xf32>,
    %51 = vector.extract_strided_slice %6 {offsets = [7, 0], sizes = [1, 32], strides = [1, 1]} : vector<8x32xf32> to vector<1x32xf32>
    %cst_31 = arith.constant dense<0.000000e+00> : vector<1x32xf32>
    %52 = tpu.matmul %49, %7, %cst_31 {dimension_numbers = #tpu.dot_dimension_numbers<[1], [0], [0], [1], [0, 0, 1, 1], [], []>} : vector<1x32xf32>, vector<32x32xf32>, vector<1x32xf32> -> vector<1x32xf32>
    %53 = arith.addf %51, %52 : vector<1x32xf32>
    %cst_32 = arith.constant 0.000000e+00 : f32
    %54 = vector.broadcast %cst_32 : f32 to vector<1x32xf32>
    %55 = arith.maximumf %53, %54 : vector<1x32xf32>
    %c7 = arith.constant 7 : index
    %c0_33 = arith.constant 0 : index
    %56 = vector.load %arg17[%c7, %c0_33] : memref<8x32xf32, #tpu.memory_space<vmem>>, vector<1x32xf32>
    tpu.vector_store %arg17[%c7, %c0_33], %55 {strides = array<i32>} : memref<8x32xf32, #tpu.memory_space<vmem>>, vector<1x32xf32>,
    %c0_34 = arith.constant 0 : index
    %c0_35 = arith.constant 0 : index
    %57 = vector.load %arg17[%c0_34, %c0_35] : memref<8x32xf32, #tpu.memory_space<vmem>>, vector<8x32xf32>
    %c0_36 = arith.constant 0 : index
    %c0_37 = arith.constant 0 : index
    %58 = vector.load %arg5[%c0_36, %c0_37] : memref<32x96xf32, #tpu.memory_space<vmem>>, vector<32x96xf32>
    %cst_38 = arith.constant dense<0.000000e+00> : vector<8x96xf32>
    %59 = tpu.matmul %57, %58, %cst_38 {dimension_numbers = #tpu.dot_dimension_numbers<[1], [0], [0], [1], [0, 0, 1, 1], [], []>} : vector<8x32xf32>, vector<32x96xf32>, vector<8x96xf32> -> vector<8x96xf32>
    %c0_39 = arith.constant 0 : index
    %c0_40 = arith.constant 0 : index
    %60 = vector.load %arg6[%c0_39, %c0_40] : memref<1x96xf32, #tpu.memory_space<vmem>>, vector<1x96xf32>
    %61 = vector.broadcast %60 : vector<1x96xf32> to vector<8x96xf32>
    %62 = arith.addf %59, %61 : vector<8x96xf32>
    %63 = vector.extract_strided_slice %62 {offsets = [0, 0], sizes = [8, 8], strides = [1, 1]} : vector<8x96xf32> to vector<8x8xf32>
    %64 = vector.extract_strided_slice %62 {offsets = [0, 32], sizes = [8, 8], strides = [1, 1]} : vector<8x96xf32> to vector<8x8xf32>
    %65 = vector.extract_strided_slice %62 {offsets = [0, 64], sizes = [8, 8], strides = [1, 1]} : vector<8x96xf32> to vector<8x8xf32>
    %66 = tpu.transpose %64, [1, 0] : vector<8x8xf32> -> vector<8x8xf32>
    %cst_41 = arith.constant dense<0.000000e+00> : vector<8x8xf32>
    %67 = tpu.matmul %63, %66, %cst_41 {dimension_numbers = #tpu.dot_dimension_numbers<[1], [0], [0], [1], [0, 0, 1, 1], [], []>} : vector<8x8xf32>, vector<8x8xf32>, vector<8x8xf32> -> vector<8x8xf32>
    %cst_42 = arith.constant dense<0xFF800000> : vector<8xf32>
    %68 = vector.multi_reduction <maximumf>, %67, %cst_42 [1] : vector<8x8xf32> to vector<8xf32>
    %69 = vector.shape_cast %68 : vector<8xf32> to vector<8x1xf32>
    %70 = vector.broadcast %69 : vector<8x1xf32> to vector<8x8xf32>
    %71 = arith.subf %67, %70 : vector<8x8xf32>
    %72 = math.exp %71 : vector<8x8xf32>
    %cst_43 = arith.constant dense<0.000000e+00> : vector<8xf32>
    %73 = vector.multi_reduction <add>, %72, %cst_43 [1] : vector<8x8xf32> to vector<8xf32>
    %74 = vector.shape_cast %73 : vector<8xf32> to vector<8x1xf32>
    %75 = tpu.reciprocal %74 {approx = true} : vector<8x1xf32> -> vector<8x1xf32>
    %76 = vector.broadcast %75 : vector<8x1xf32> to vector<8x8xf32>
    %77 = arith.mulf %72, %76 : vector<8x8xf32>
    %cst_44 = arith.constant dense<0.000000e+00> : vector<8x8xf32>
    %78 = tpu.matmul %77, %65, %cst_44 {dimension_numbers = #tpu.dot_dimension_numbers<[1], [0], [0], [1], [0, 0, 1, 1], [], []>} : vector<8x8xf32>, vector<8x8xf32>, vector<8x8xf32> -> vector<8x8xf32>
    %c0_45 = arith.constant 0 : index
    %c0_46 = arith.constant 0 : index
    %79 = vector.load %arg18[%c0_45, %c0_46] : memref<8x32xf32, #tpu.memory_space<vmem>>, vector<8x8xf32>
    tpu.vector_store %arg18[%c0_45, %c0_46], %78 {strides = array<i32>} : memref<8x32xf32, #tpu.memory_space<vmem>>, vector<8x8xf32>,
    %80 = vector.extract_strided_slice %62 {offsets = [0, 8], sizes = [8, 8], strides = [1, 1]} : vector<8x96xf32> to vector<8x8xf32>
    %81 = vector.extract_strided_slice %62 {offsets = [0, 40], sizes = [8, 8], strides = [1, 1]} : vector<8x96xf32> to vector<8x8xf32>
    %82 = vector.extract_strided_slice %62 {offsets = [0, 72], sizes = [8, 8], strides = [1, 1]} : vector<8x96xf32> to vector<8x8xf32>
    %83 = tpu.transpose %81, [1, 0] : vector<8x8xf32> -> vector<8x8xf32>
    %cst_47 = arith.constant dense<0.000000e+00> : vector<8x8xf32>
    %84 = tpu.matmul %80, %83, %cst_47 {dimension_numbers = #tpu.dot_dimension_numbers<[1], [0], [0], [1], [0, 0, 1, 1], [], []>} : vector<8x8xf32>, vector<8x8xf32>, vector<8x8xf32> -> vector<8x8xf32>
    %cst_48 = arith.constant dense<0xFF800000> : vector<8xf32>
    %85 = vector.multi_reduction <maximumf>, %84, %cst_48 [1] : vector<8x8xf32> to vector<8xf32>
    %86 = vector.shape_cast %85 : vector<8xf32> to vector<8x1xf32>
    %87 = vector.broadcast %86 : vector<8x1xf32> to vector<8x8xf32>
    %88 = arith.subf %84, %87 : vector<8x8xf32>
    %89 = math.exp %88 : vector<8x8xf32>
    %cst_49 = arith.constant dense<0.000000e+00> : vector<8xf32>
    %90 = vector.multi_reduction <add>, %89, %cst_49 [1] : vector<8x8xf32> to vector<8xf32>
    %91 = vector.shape_cast %90 : vector<8xf32> to vector<8x1xf32>
    %92 = tpu.reciprocal %91 {approx = true} : vector<8x1xf32> -> vector<8x1xf32>
    %93 = vector.broadcast %92 : vector<8x1xf32> to vector<8x8xf32>
    %94 = arith.mulf %89, %93 : vector<8x8xf32>
    %cst_50 = arith.constant dense<0.000000e+00> : vector<8x8xf32>
    %95 = tpu.matmul %94, %82, %cst_50 {dimension_numbers = #tpu.dot_dimension_numbers<[1], [0], [0], [1], [0, 0, 1, 1], [], []>} : vector<8x8xf32>, vector<8x8xf32>, vector<8x8xf32> -> vector<8x8xf32>
    %c0_51 = arith.constant 0 : index
    %c8 = arith.constant 8 : index
    %96 = vector.load %arg18[%c0_51, %c8] : memref<8x32xf32, #tpu.memory_space<vmem>>, vector<8x8xf32>
    tpu.vector_store %arg18[%c0_51, %c8], %95 {strides = array<i32>} : memref<8x32xf32, #tpu.memory_space<vmem>>, vector<8x8xf32>,
    %97 = vector.extract_strided_slice %62 {offsets = [0, 16], sizes = [8, 8], strides = [1, 1]} : vector<8x96xf32> to vector<8x8xf32>
    %98 = vector.extract_strided_slice %62 {offsets = [0, 48], sizes = [8, 8], strides = [1, 1]} : vector<8x96xf32> to vector<8x8xf32>
    %99 = vector.extract_strided_slice %62 {offsets = [0, 80], sizes = [8, 8], strides = [1, 1]} : vector<8x96xf32> to vector<8x8xf32>
    %100 = tpu.transpose %98, [1, 0] : vector<8x8xf32> -> vector<8x8xf32>
    %cst_52 = arith.constant dense<0.000000e+00> : vector<8x8xf32>
    %101 = tpu.matmul %97, %100, %cst_52 {dimension_numbers = #tpu.dot_dimension_numbers<[1], [0], [0], [1], [0, 0, 1, 1], [], []>} : vector<8x8xf32>, vector<8x8xf32>, vector<8x8xf32> -> vector<8x8xf32>
    %cst_53 = arith.constant dense<0xFF800000> : vector<8xf32>
    %102 = vector.multi_reduction <maximumf>, %101, %cst_53 [1] : vector<8x8xf32> to vector<8xf32>
    %103 = vector.shape_cast %102 : vector<8xf32> to vector<8x1xf32>
    %104 = vector.broadcast %103 : vector<8x1xf32> to vector<8x8xf32>
    %105 = arith.subf %101, %104 : vector<8x8xf32>
    %106 = math.exp %105 : vector<8x8xf32>
    %cst_54 = arith.constant dense<0.000000e+00> : vector<8xf32>
    %107 = vector.multi_reduction <add>, %106, %cst_54 [1] : vector<8x8xf32> to vector<8xf32>
    %108 = vector.shape_cast %107 : vector<8xf32> to vector<8x1xf32>
    %109 = tpu.reciprocal %108 {approx = true} : vector<8x1xf32> -> vector<8x1xf32>
    %110 = vector.broadcast %109 : vector<8x1xf32> to vector<8x8xf32>
    %111 = arith.mulf %106, %110 : vector<8x8xf32>
    %cst_55 = arith.constant dense<0.000000e+00> : vector<8x8xf32>
    %112 = tpu.matmul %111, %99, %cst_55 {dimension_numbers = #tpu.dot_dimension_numbers<[1], [0], [0], [1], [0, 0, 1, 1], [], []>} : vector<8x8xf32>, vector<8x8xf32>, vector<8x8xf32> -> vector<8x8xf32>
    %c0_56 = arith.constant 0 : index
    %c16 = arith.constant 16 : index
    %113 = vector.load %arg18[%c0_56, %c16] : memref<8x32xf32, #tpu.memory_space<vmem>>, vector<8x8xf32>
    tpu.vector_store %arg18[%c0_56, %c16], %112 {strides = array<i32>} : memref<8x32xf32, #tpu.memory_space<vmem>>, vector<8x8xf32>,
    %114 = vector.extract_strided_slice %62 {offsets = [0, 24], sizes = [8, 8], strides = [1, 1]} : vector<8x96xf32> to vector<8x8xf32>
    %115 = vector.extract_strided_slice %62 {offsets = [0, 56], sizes = [8, 8], strides = [1, 1]} : vector<8x96xf32> to vector<8x8xf32>
    %116 = vector.extract_strided_slice %62 {offsets = [0, 88], sizes = [8, 8], strides = [1, 1]} : vector<8x96xf32> to vector<8x8xf32>
    %117 = tpu.transpose %115, [1, 0] : vector<8x8xf32> -> vector<8x8xf32>
    %cst_57 = arith.constant dense<0.000000e+00> : vector<8x8xf32>
    %118 = tpu.matmul %114, %117, %cst_57 {dimension_numbers = #tpu.dot_dimension_numbers<[1], [0], [0], [1], [0, 0, 1, 1], [], []>} : vector<8x8xf32>, vector<8x8xf32>, vector<8x8xf32> -> vector<8x8xf32>
    %cst_58 = arith.constant dense<0xFF800000> : vector<8xf32>
    %119 = vector.multi_reduction <maximumf>, %118, %cst_58 [1] : vector<8x8xf32> to vector<8xf32>
    %120 = vector.shape_cast %119 : vector<8xf32> to vector<8x1xf32>
    %121 = vector.broadcast %120 : vector<8x1xf32> to vector<8x8xf32>
    %122 = arith.subf %118, %121 : vector<8x8xf32>
    %123 = math.exp %122 : vector<8x8xf32>
    %cst_59 = arith.constant dense<0.000000e+00> : vector<8xf32>
    %124 = vector.multi_reduction <add>, %123, %cst_59 [1] : vector<8x8xf32> to vector<8xf32>
    %125 = vector.shape_cast %124 : vector<8xf32> to vector<8x1xf32>
    %126 = tpu.reciprocal %125 {approx = true} : vector<8x1xf32> -> vector<8x1xf32>
    %127 = vector.broadcast %126 : vector<8x1xf32> to vector<8x8xf32>
    %128 = arith.mulf %123, %127 : vector<8x8xf32>
    %cst_60 = arith.constant dense<0.000000e+00> : vector<8x8xf32>
    %129 = tpu.matmul %128, %116, %cst_60 {dimension_numbers = #tpu.dot_dimension_numbers<[1], [0], [0], [1], [0, 0, 1, 1], [], []>} : vector<8x8xf32>, vector<8x8xf32>, vector<8x8xf32> -> vector<8x8xf32>
    %c0_61 = arith.constant 0 : index
    %c24 = arith.constant 24 : index
    %130 = vector.load %arg18[%c0_61, %c24] : memref<8x32xf32, #tpu.memory_space<vmem>>, vector<8x8xf32>
    tpu.vector_store %arg18[%c0_61, %c24], %129 {strides = array<i32>} : memref<8x32xf32, #tpu.memory_space<vmem>>, vector<8x8xf32>,
    %c0_62 = arith.constant 0 : index
    %c0_63 = arith.constant 0 : index
    %131 = vector.load %arg18[%c0_62, %c0_63] : memref<8x32xf32, #tpu.memory_space<vmem>>, vector<8x32xf32>
    %c0_64 = arith.constant 0 : index
    %c0_65 = arith.constant 0 : index
    %132 = vector.load %arg7[%c0_64, %c0_65] : memref<32x32xf32, #tpu.memory_space<vmem>>, vector<32x32xf32>
    %cst_66 = arith.constant dense<0.000000e+00> : vector<8x32xf32>
    %133 = tpu.matmul %131, %132, %cst_66 {dimension_numbers = #tpu.dot_dimension_numbers<[1], [0], [0], [1], [0, 0, 1, 1], [], []>} : vector<8x32xf32>, vector<32x32xf32>, vector<8x32xf32> -> vector<8x32xf32>
    %c0_67 = arith.constant 0 : index
    %c0_68 = arith.constant 0 : index
    %134 = vector.load %arg8[%c0_67, %c0_68] : memref<1x32xf32, #tpu.memory_space<vmem>>, vector<1x32xf32>
    %135 = vector.broadcast %134 : vector<1x32xf32> to vector<8x32xf32>
    %136 = arith.addf %133, %135 : vector<8x32xf32>
    %cst_69 = arith.constant 0.000000e+00 : f32
    %137 = vector.broadcast %cst_69 : f32 to vector<8x32xf32>
    %138 = arith.maximumf %136, %137 : vector<8x32xf32>
    %c0_70 = arith.constant 0 : index
    %c0_71 = arith.constant 0 : index
    %139 = vector.load %arg9[%c0_70, %c0_71] : memref<32x96xf32, #tpu.memory_space<vmem>>, vector<32x96xf32>
    %cst_72 = arith.constant dense<0.000000e+00> : vector<8x96xf32>
    %140 = tpu.matmul %138, %139, %cst_72 {dimension_numbers = #tpu.dot_dimension_numbers<[1], [0], [0], [1], [0, 0, 1, 1], [], []>} : vector<8x32xf32>, vector<32x96xf32>, vector<8x96xf32> -> vector<8x96xf32>
    %c0_73 = arith.constant 0 : index
    %c0_74 = arith.constant 0 : index
    %141 = vector.load %arg10[%c0_73, %c0_74] : memref<1x96xf32, #tpu.memory_space<vmem>>, vector<1x96xf32>
    %142 = vector.broadcast %141 : vector<1x96xf32> to vector<8x96xf32>
    %143 = arith.addf %140, %142 : vector<8x96xf32>
    %144 = vector.extract_strided_slice %143 {offsets = [0, 0], sizes = [8, 16], strides = [1, 1]} : vector<8x96xf32> to vector<8x16xf32>
    %145 = vector.extract_strided_slice %143 {offsets = [0, 32], sizes = [8, 16], strides = [1, 1]} : vector<8x96xf32> to vector<8x16xf32>
    %146 = vector.extract_strided_slice %143 {offsets = [0, 64], sizes = [8, 16], strides = [1, 1]} : vector<8x96xf32> to vector<8x16xf32>
    %147 = tpu.transpose %145, [1, 0] : vector<8x16xf32> -> vector<16x8xf32>
    %cst_75 = arith.constant dense<0.000000e+00> : vector<8x8xf32>
    %148 = tpu.matmul %144, %147, %cst_75 {dimension_numbers = #tpu.dot_dimension_numbers<[1], [0], [0], [1], [0, 0, 1, 1], [], []>} : vector<8x16xf32>, vector<16x8xf32>, vector<8x8xf32> -> vector<8x8xf32>
    %cst_76 = arith.constant dense<0xFF800000> : vector<8xf32>
    %149 = vector.multi_reduction <maximumf>, %148, %cst_76 [1] : vector<8x8xf32> to vector<8xf32>
    %150 = vector.shape_cast %149 : vector<8xf32> to vector<8x1xf32>
    %151 = vector.broadcast %150 : vector<8x1xf32> to vector<8x8xf32>
    %152 = arith.subf %148, %151 : vector<8x8xf32>
    %153 = math.exp %152 : vector<8x8xf32>
    %cst_77 = arith.constant dense<0.000000e+00> : vector<8xf32>
    %154 = vector.multi_reduction <add>, %153, %cst_77 [1] : vector<8x8xf32> to vector<8xf32>
    %155 = vector.shape_cast %154 : vector<8xf32> to vector<8x1xf32>
    %156 = tpu.reciprocal %155 {approx = true} : vector<8x1xf32> -> vector<8x1xf32>
    %157 = vector.broadcast %156 : vector<8x1xf32> to vector<8x8xf32>
    %158 = arith.mulf %153, %157 : vector<8x8xf32>
    %cst_78 = arith.constant dense<0.000000e+00> : vector<8x16xf32>
    %159 = tpu.matmul %158, %146, %cst_78 {dimension_numbers = #tpu.dot_dimension_numbers<[1], [0], [0], [1], [0, 0, 1, 1], [], []>} : vector<8x8xf32>, vector<8x16xf32>, vector<8x16xf32> -> vector<8x16xf32>
    %c0_79 = arith.constant 0 : index
    %c0_80 = arith.constant 0 : index
    %160 = vector.load %arg18[%c0_79, %c0_80] : memref<8x32xf32, #tpu.memory_space<vmem>>, vector<8x16xf32>
    tpu.vector_store %arg18[%c0_79, %c0_80], %159 {strides = array<i32>} : memref<8x32xf32, #tpu.memory_space<vmem>>, vector<8x16xf32>,
    %161 = vector.extract_strided_slice %143 {offsets = [0, 16], sizes = [8, 16], strides = [1, 1]} : vector<8x96xf32> to vector<8x16xf32>
    %162 = vector.extract_strided_slice %143 {offsets = [0, 48], sizes = [8, 16], strides = [1, 1]} : vector<8x96xf32> to vector<8x16xf32>
    %163 = vector.extract_strided_slice %143 {offsets = [0, 80], sizes = [8, 16], strides = [1, 1]} : vector<8x96xf32> to vector<8x16xf32>
    %164 = tpu.transpose %162, [1, 0] : vector<8x16xf32> -> vector<16x8xf32>
    %cst_81 = arith.constant dense<0.000000e+00> : vector<8x8xf32>
    %165 = tpu.matmul %161, %164, %cst_81 {dimension_numbers = #tpu.dot_dimension_numbers<[1], [0], [0], [1], [0, 0, 1, 1], [], []>} : vector<8x16xf32>, vector<16x8xf32>, vector<8x8xf32> -> vector<8x8xf32>
    %cst_82 = arith.constant dense<0xFF800000> : vector<8xf32>
    %166 = vector.multi_reduction <maximumf>, %165, %cst_82 [1] : vector<8x8xf32> to vector<8xf32>
    %167 = vector.shape_cast %166 : vector<8xf32> to vector<8x1xf32>
    %168 = vector.broadcast %167 : vector<8x1xf32> to vector<8x8xf32>
    %169 = arith.subf %165, %168 : vector<8x8xf32>
    %170 = math.exp %169 : vector<8x8xf32>
    %cst_83 = arith.constant dense<0.000000e+00> : vector<8xf32>
    %171 = vector.multi_reduction <add>, %170, %cst_83 [1] : vector<8x8xf32> to vector<8xf32>
    %172 = vector.shape_cast %171 : vector<8xf32> to vector<8x1xf32>
    %173 = tpu.reciprocal %172 {approx = true} : vector<8x1xf32> -> vector<8x1xf32>
    %174 = vector.broadcast %173 : vector<8x1xf32> to vector<8x8xf32>
    %175 = arith.mulf %170, %174 : vector<8x8xf32>
    %cst_84 = arith.constant dense<0.000000e+00> : vector<8x16xf32>
    %176 = tpu.matmul %175, %163, %cst_84 {dimension_numbers = #tpu.dot_dimension_numbers<[1], [0], [0], [1], [0, 0, 1, 1], [], []>} : vector<8x8xf32>, vector<8x16xf32>, vector<8x16xf32> -> vector<8x16xf32>
    %c0_85 = arith.constant 0 : index
    %c16_86 = arith.constant 16 : index
    %177 = vector.load %arg18[%c0_85, %c16_86] : memref<8x32xf32, #tpu.memory_space<vmem>>, vector<8x16xf32>
    tpu.vector_store %arg18[%c0_85, %c16_86], %176 {strides = array<i32>} : memref<8x32xf32, #tpu.memory_space<vmem>>, vector<8x16xf32>,
    %c0_87 = arith.constant 0 : index
    %c0_88 = arith.constant 0 : index
    %178 = vector.load %arg18[%c0_87, %c0_88] : memref<8x32xf32, #tpu.memory_space<vmem>>, vector<8x32xf32>
    %c0_89 = arith.constant 0 : index
    %c0_90 = arith.constant 0 : index
    %179 = vector.load %arg11[%c0_89, %c0_90] : memref<32x32xf32, #tpu.memory_space<vmem>>, vector<32x32xf32>
    %cst_91 = arith.constant dense<0.000000e+00> : vector<8x32xf32>
    %180 = tpu.matmul %178, %179, %cst_91 {dimension_numbers = #tpu.dot_dimension_numbers<[1], [0], [0], [1], [0, 0, 1, 1], [], []>} : vector<8x32xf32>, vector<32x32xf32>, vector<8x32xf32> -> vector<8x32xf32>
    %c0_92 = arith.constant 0 : index
    %c0_93 = arith.constant 0 : index
    %181 = vector.load %arg12[%c0_92, %c0_93] : memref<1x32xf32, #tpu.memory_space<vmem>>, vector<1x32xf32>
    %182 = vector.broadcast %181 : vector<1x32xf32> to vector<8x32xf32>
    %183 = arith.addf %180, %182 : vector<8x32xf32>
    %cst_94 = arith.constant 0.000000e+00 : f32
    %184 = vector.broadcast %cst_94 : f32 to vector<8x32xf32>
    %185 = arith.maximumf %183, %184 : vector<8x32xf32>
    %c0_95 = arith.constant 0 : index
    %c0_96 = arith.constant 0 : index
    %186 = vector.load %arg13[%c0_95, %c0_96] : memref<1x8xf32, #tpu.memory_space<vmem>>, vector<1x8xf32>
    %cst_97 = arith.constant dense<0.000000e+00> : vector<1x32xf32>
    %187 = tpu.matmul %186, %185, %cst_97 {dimension_numbers = #tpu.dot_dimension_numbers<[1], [0], [0], [1], [0, 0, 1, 1], [], []>} : vector<1x8xf32>, vector<8x32xf32>, vector<1x32xf32> -> vector<1x32xf32>
    %c0_98 = arith.constant 0 : index
    %c0_99 = arith.constant 0 : index
    %188 = vector.load %arg14[%c0_98, %c0_99] : memref<32x3xf32, #tpu.memory_space<vmem>>, vector<32x3xf32>
    %cst_100 = arith.constant dense<0.000000e+00> : vector<1x3xf32>
    %189 = tpu.matmul %187, %188, %cst_100 {dimension_numbers = #tpu.dot_dimension_numbers<[1], [0], [0], [1], [0, 0, 1, 1], [], []>} : vector<1x32xf32>, vector<32x3xf32>, vector<1x3xf32> -> vector<1x3xf32>
    %c0_101 = arith.constant 0 : index
    %c0_102 = arith.constant 0 : index
    %190 = vector.load %arg15[%c0_101, %c0_102] : memref<1x3xf32, #tpu.memory_space<vmem>>, vector<1x3xf32>
    %191 = arith.addf %189, %190 : vector<1x3xf32>
    %c0_103 = arith.constant 0 : index
    %c0_104 = arith.constant 0 : index
    %c0_105 = arith.constant 0 : index
    %192 = vector.load %arg16[%c0_103, %c0_104, %c0_105] : memref<1x1x3xf32, #tpu.memory_space<vmem>>, vector<1x1x3xf32>
    %193 = vector.shape_cast %192 : vector<1x1x3xf32> to vector<1x3xf32>
    %194 = vector.shape_cast %191 : vector<1x3xf32> to vector<1x1x3xf32>
    tpu.vector_store %arg16[%c0_103, %c0_104, %c0_105], %194 {strides = array<i32>} : memref<1x1x3xf32, #tpu.memory_space<vmem>>, vector<1x1x3xf32>,
    return
  }
  func.func @transform_0(%arg0: i32) -> (i32, i32, i32) {
    %c0_i32 = arith.constant 0 : i32
    %c0_i32_0 = arith.constant 0 : i32
    %c0_i32_1 = arith.constant 0 : i32
    return %arg0, %c0_i32, %c0_i32_0 : i32, i32, i32
  }
  func.func @transform_1(%arg0: i32) -> (i32, i32) {
    %c0_i32 = arith.constant 0 : i32
    %c0_i32_0 = arith.constant 0 : i32
    %c0_i32_1 = arith.constant 0 : i32
    return %c0_i32, %c0_i32_0 : i32, i32
  }
  func.func @transform_2(%arg0: i32) -> (i32, i32) {
    %c0_i32 = arith.constant 0 : i32
    %c0_i32_0 = arith.constant 0 : i32
    %c0_i32_1 = arith.constant 0 : i32
    return %c0_i32, %c0_i32_0 : i32, i32
  }
  func.func @transform_3(%arg0: i32) -> (i32, i32) {
    %c0_i32 = arith.constant 0 : i32
    %c0_i32_0 = arith.constant 0 : i32
    %c0_i32_1 = arith.constant 0 : i32
    return %c0_i32, %c0_i32_0 : i32, i32
  }
  func.func @transform_4(%arg0: i32) -> (i32, i32) {
    %c0_i32 = arith.constant 0 : i32
    %c0_i32_0 = arith.constant 0 : i32
    %c0_i32_1 = arith.constant 0 : i32
    return %c0_i32, %c0_i32_0 : i32, i32
  }
  func.func @transform_5(%arg0: i32) -> (i32, i32) {
    %c0_i32 = arith.constant 0 : i32
    %c0_i32_0 = arith.constant 0 : i32
    %c0_i32_1 = arith.constant 0 : i32
    return %c0_i32, %c0_i32_0 : i32, i32
  }
  func.func @transform_6(%arg0: i32) -> (i32, i32) {
    %c0_i32 = arith.constant 0 : i32
    %c0_i32_0 = arith.constant 0 : i32
    %c0_i32_1 = arith.constant 0 : i32
    return %c0_i32, %c0_i32_0 : i32, i32
  }
  func.func @transform_7(%arg0: i32) -> (i32, i32) {
    %c0_i32 = arith.constant 0 : i32
    %c0_i32_0 = arith.constant 0 : i32
    %c0_i32_1 = arith.constant 0 : i32
    return %c0_i32, %c0_i32_0 : i32, i32
  }
  func.func @transform_8(%arg0: i32) -> (i32, i32) {
    %c0_i32 = arith.constant 0 : i32
    %c0_i32_0 = arith.constant 0 : i32
    %c0_i32_1 = arith.constant 0 : i32
    return %c0_i32, %c0_i32_0 : i32, i32
  }
  func.func @transform_9(%arg0: i32) -> (i32, i32) {
    %c0_i32 = arith.constant 0 : i32
    %c0_i32_0 = arith.constant 0 : i32
    %c0_i32_1 = arith.constant 0 : i32
    return %c0_i32, %c0_i32_0 : i32, i32
  }
  func.func @transform_10(%arg0: i32) -> (i32, i32) {
    %c0_i32 = arith.constant 0 : i32
    %c0_i32_0 = arith.constant 0 : i32
    %c0_i32_1 = arith.constant 0 : i32
    return %c0_i32, %c0_i32_0 : i32, i32
  }
  func.func @transform_11(%arg0: i32) -> (i32, i32) {
    %c0_i32 = arith.constant 0 : i32
    %c0_i32_0 = arith.constant 0 : i32
    %c0_i32_1 = arith.constant 0 : i32
    return %c0_i32, %c0_i32_0 : i32, i32
  }
  func.func @transform_12(%arg0: i32) -> (i32, i32) {
    %c0_i32 = arith.constant 0 : i32
    %c0_i32_0 = arith.constant 0 : i32
    %c0_i32_1 = arith.constant 0 : i32
    return %c0_i32, %c0_i32_0 : i32, i32
  }
  func.func @transform_13(%arg0: i32) -> (i32, i32) {
    %c0_i32 = arith.constant 0 : i32
    %c0_i32_0 = arith.constant 0 : i32
    %c0_i32_1 = arith.constant 0 : i32
    return %c0_i32, %c0_i32_0 : i32, i32
  }
  func.func @transform_14(%arg0: i32) -> (i32, i32) {
    %c0_i32 = arith.constant 0 : i32
    %c0_i32_0 = arith.constant 0 : i32
    %c0_i32_1 = arith.constant 0 : i32
    return %c0_i32, %c0_i32_0 : i32, i32
  }
  func.func @transform_15(%arg0: i32) -> (i32, i32, i32) {
    %c0_i32 = arith.constant 0 : i32
    %c0_i32_0 = arith.constant 0 : i32
    %c0_i32_1 = arith.constant 0 : i32
    return %arg0, %c0_i32, %c0_i32_0 : i32, i32, i32
  }
}

</mosaic_0001>

<bundles_post_ra>
// kernel: attention_network_forward.1
= control target key start
LH: loop header
LB: loop body
LE: loop exit
PB: predicated region body
PF: predicated region fallthrough
CT: control target
= control target key end

     0   :  { %s4611_s0 = inlined_call_operand.vmem [shape: f32[2,8,4], index: 0, kind: input, shape index: {}]   ;;  %s4612_s1 = inlined_call_operand.hbm [shape: f32[4,32], index: 1, kind: input, shape index: {}]   ;;  %s4613_s2 = inlined_call_operand.vmem [shape: f32[32,32], index: 2, kind: input, shape index: {}]   ;;  %s4614_s3 = inlined_call_operand.hbm [shape: f32[1,32], index: 3, kind: input, shape index: {}]   ;;  %s4615_s4 = inlined_call_operand.vmem [shape: f32[32,96], index: 4, kind: input, shape index: {}]   ;;  %s4616_s5 = inlined_call_operand.hbm [shape: f32[1,96], index: 5, kind: input, shape index: {}]   ;;  %s4617_s6 = inlined_call_operand.hbm [shape: f32[32,32], index: 6, kind: input, shape index: {}]   ;;  %s4618_s7 = inlined_call_operand.hbm [shape: f32[1,32], index: 7, kind: input, shape index: {}]   ;;  %s4619_s8 = inlined_call_operand.hbm [shape: f32[32,96], index: 8, kind: input, shape index: {}]   ;;  %s4620_s9 = inlined_call_operand.hbm [shape: f32[1,96], index: 9, kind: input, shape index: {}]   ;;  %s4621_s10 = inlined_call_operand.hbm [shape: f32[32,32], index: 10, kind: input, shape index: {}]   ;;  %s4622_s11 = inlined_call_operand.hbm [shape: f32[1,32], index: 11, kind: input, shape index: {}]   ;;  %s4623_s12 = inlined_call_operand.hbm [shape: f32[1,8], index: 12, kind: input, shape index: {}]   ;;  %s4624_s13 = inlined_call_operand.vmem [shape: f32[32,3], index: 13, kind: input, shape index: {}]   ;;  %s4625_s14 = inlined_call_operand.hbm [shape: f32[1,3], index: 14, kind: input, shape index: {}]   ;;  %s4626_s15 = inlined_call_operand.hbm [shape: f32[2,1,3], index: 15, kind: output, shape index: {}]  }
   0x1   :  { %4635 = sst [smem:[#allocation36_spill]] %s4614_s3 }
   0x2   :  { %4636 = sst [smem:[#allocation37_spill]] %s4617_s6 }
   0x3   :  { %20 = vsyncpa [#allocation5], 0 }
   0x4   :  { %21 = vsyncpa [#allocation8], 0 }
   0x5   :  { %22 = vsyncpa [#allocation11], 0 }
   0x6   :  { %23 = vsyncpa [#allocation14], 0 }
   0x7   :  { %24 = vsyncpa [#allocation17], 0 }
   0x8   :  { %25 = vsyncpa [#allocation20], 0 }
   0x9   :  { %26 = vsyncpa [#allocation6], 0 }
   0xa   :  { %28 = vsyncpa [#allocation6 + $0x1], 0  ;;  %s4102_s18 = smov 0   ;;  %s4104_s19 = smov 0  }
   0xb   :  { %s4106_s20 = smov 0   ;;  %s4108_s21 = smov 0  }
   0xc LB: > { %4637 = sst [smem:[#allocation30_spill]] %s3978_s18  ;;  %s4123_s22 = sadd.s32 4294967295, %s3990_s21   ;;  %s3990_s21 = sphi %s4108_s21, %s4667_s21   ;;  %s3986_s20 = sphi %s4106_s20, %s4669_s20   ;;  %s3982_s19 = sphi %s4104_s19, %s4671_s19   ;;  %s3978_s18 = sphi %s4102_s18, %s4670_s18  }
   0xd   : > { %4638 = sst [smem:[#allocation31_spill]] %s3986_s20  ;;  %s3054_s23 = sadd.s32 4294967294, %s3990_s21  }
   0xe   : > { %4639 = sst [smem:[#allocation32_spill]] %s3990_s21  ;;  %s4127_s24 = sadd.s32 1, %s3990_s21  }
   0xf   : > { %4640 = sst [smem:[#allocation33_spill]] %s4127_s24  ;;  %s361_s25 = sadd.s32 1, %s3986_s20 }
  0x10   : > { %s358_s26 = ssub.s32 %s3990_s21, %s4127_s24  ;;  %p371_p0 = scmp.ne.s32.totalorder %s3986_s20, %s3982_s19 }
  0x11   : > { %p359_p1 = scmp.eq.s32.totalorder %s358_s26, 0  ;;  %p372_p2 = scmp.eq.s32.totalorder %s4123_s22, 1 }
  0x12   : > { %p377_p3 = scmp.ne.s32.totalorder %s3982_s19, %s3978_s18  ;;  %p378_p4 = scmp.eq.s32.totalorder %s3054_s23, 1 }
  0x13   : > { %s4138_s27 = scalar_select %p359_p1, %s3986_s20, %s361_s25  }
  0x14   : > { %p4140_p5 = por %p372_p2, %p371_p0  ;;  %p4144_p6 = por %p378_p4, %p377_p3 }
  0x15   : > { %4641 = sst [smem:[#allocation34_spill]] %s4138_s27  ;;  %p3055_p7 = scmp.ge.s32.totalorder %s3990_s21, 1 }
  0x16   : > { %s4642_s28 = scalar_select %p4140_p5, 1, 0 }
  0x17   : > { %s4643_s29 = scalar_select %p4144_p6, 1, 0 }
  0x18   : > { %p385_p8 = scmp.lt.s32.totalorder %s3990_s21, 3  ;;  %p4632_p9 = scmp.eq.s32.totalorder %s4123_s22, 0 }
  0x19   : > { %4644 = sst [smem:[#allocation35_spill]] %s4643_s29  ;;  %s3992_s16 = smov [#allocation7]  }
  0x1a   : > { %p4151_p10 = pnand %p3055_p7, %p385_p8  ;;  %s412_s17 = sshll.u32 %s3992_s16, 4  ;;  %s413_s17 = int_to_ptr.vmem [resolvable:$true] %s412_s17 }
  0x1b   : > { %s3993_s23 = smov [#allocation10]   ;;  %s3994_s27 = smov [#allocation13]  }
  0x1c   : > { %p3474_p11 = pneg %p4151_p10  ;;  %s436_s25 = sshll.u32 %s3993_s23, 4  ;;  %s4163_s25 = int_to_ptr.vmem [resolvable:$true] %s436_s25 }
  0x1d   : > { %s460_s20 = sshll.u32 %s3994_s27, 4  ;;  %s3631_s16 = scalar_lea.vmem %s413_s17, 16  ;;  %s461_s20 = int_to_ptr.vmem [resolvable:$true] %s460_s20 }
  0x1e   : > { %p4159_p12 = pnand %p4632_p9, %p3474_p11  ;;  %p3632_p0 = scmp.ne.s32.totalorder %s413_s17, %s3631_s16 }
  0x1f   : > { %s3638_s23 = scalar_lea.vmem %s413_s17, 32  ;;  %p3639_p3 = scmp.lt.s32.totalorder %s413_s17, %s413_s17 }
  0x20   : > { %p4167_p13 = pneg %p4159_p12  ;;  %p3640_p4 = scmp.lt.s32.totalorder %s3638_s23, %s3631_s16 }
  0x22   : > { %p3634_p1 = pnand %p3632_p0, %p4167_p13  ;;  %p3641_p7 = por %p3640_p4, %p3639_p3 }
  0x24   : > { %p3635_p2 = pneg %p3634_p1 }
  0x26   : > { %p3642_p8 = pnand %p3641_p7, %p3635_p2 }
  0x28   : > { %3645 = shalt.err (!%p3642_p8)
}
  0x29   : > { %s4648_s3 = sld [smem:[#allocation36_spill]]  ;;  %s3657_s18 = scalar_lea.vmem %s4163_s25, 512 }
  0x2a   : > { %p3658_p11 = scmp.ne.s32.totalorder %s4163_s25, %s3657_s18  ;;  %p3665_p9 = scmp.lt.s32.totalorder %s4163_s25, %s4163_s25 }
  0x2b   : > { %p3666_p3 = scmp.lt.s32.totalorder %s3657_s18, %s3657_s18 }
  0x2c   : > { %p3660_p0 = pnand %p3658_p11, %p4167_p13 }
  0x2d   : > { %p3667_p2 = por %p3666_p3, %p3665_p9 }
  0x2e   : > { %p3661_p1 = pneg %p3660_p0 }
  0x2f   : > { %3480 = dma.hbm_to_vmem [thread:$0]  (!%p4159_p12), %s4648_s3, 16, %s413_s17, [#allocation8]  }
  0x30   : > { %p3668_p4 = pnand %p3667_p2, %p3661_p1 }
  0x32   : > { %3671 = shalt.err (!%p3668_p4)
}
  0x33   : > { %s3995_s16 = smov 128   ;;  %s3996_s29 = smov 8  }
  0x34   : > { %s4649_s6 = sld [smem:[#allocation37_spill]]  ;;  %s3683_s27 = scalar_lea.vmem %s461_s20, 512 }
  0x35   : > { %p3684_p7 = scmp.ne.s32.totalorder %s461_s20, %s3683_s27  ;;  %p3691_p11 = scmp.lt.s32.totalorder %s461_s20, %s461_s20 }
  0x36   : > { %p3692_p0 = scmp.lt.s32.totalorder %s3683_s27, %s3683_s27 }
  0x37   : > { %p3686_p9 = pnand %p3684_p7, %p4167_p13 }
  0x38   : > { %p3693_p1 = por %p3692_p0, %p3691_p11 }
  0x39   : > { %p3687_p8 = pneg %p3686_p9 }
  0x3a   : > { %3486 = dma.hbm_to_vmem [thread:$0]  (!%p4159_p12), %s4649_s6, 512, %s4163_s25, [#allocation11], %s3995_s16, %s3995_s16, %s3996_s29  }
  0x3b   : > { %p3694_p3 = pnand %p3693_p1, %p3687_p8 }
  0x3d   : > { %3697 = shalt.err (!%p3694_p3)
}
  0x3e   : > { %3492 = dma.hbm_to_vmem [thread:$0]  (!%p4159_p12), %s4619_s8, 512, %s461_s20, [#allocation14], %s3995_s16, %s3995_s16, %s3996_s29  }
  0x3f   : > { %s3997_s25 = smov [#allocation16]   ;;  %s3998_s23 = smov [#allocation19]  }
  0x40   : > { %s484_s17 = sshll.u32 %s3997_s25, 4  ;;  %s509_s6 = sshll.u32 %s3998_s23, 4  ;;  %s485_s17 = int_to_ptr.vmem [resolvable:$true] %s484_s17  ;;  %s510_s6 = int_to_ptr.vmem [resolvable:$true] %s509_s6 }
  0x41   : > { %s3709_s21 = scalar_lea.vmem %s485_s17, 512  ;;  %p3717_p9 = scmp.lt.s32.totalorder %s485_s17, %s485_s17 }
  0x42   : > { %p3710_p2 = scmp.ne.s32.totalorder %s485_s17, %s3709_s21  ;;  %p3718_p8 = scmp.lt.s32.totalorder %s3709_s21, %s3709_s21 }
  0x44   : > { %p3712_p4 = pnand %p3710_p2, %p4167_p13  ;;  %p3719_p11 = por %p3718_p8, %p3717_p9 }
  0x46   : > { %p3713_p7 = pneg %p3712_p4 }
  0x48   : > { %p3720_p0 = pnand %p3719_p11, %p3713_p7 }
  0x4a   : > { %3723 = shalt.err (!%p3720_p0)
}
  0x4b   : > { %3498 = dma.hbm_to_vmem [thread:$0]  (!%p4159_p12), %s4621_s10, 512, %s485_s17, [#allocation17], %s3995_s16, %s3995_s16, %s3996_s29  }
  0x4c   : > { %s3735_s27 = scalar_lea.vmem %s510_s6, 16  ;;  %s3742_s21 = scalar_lea.vmem %s510_s6, 32 }
  0x4d   : > { %p3736_p1 = scmp.ne.s32.totalorder %s510_s6, %s3735_s27  ;;  %p3743_p4 = scmp.lt.s32.totalorder %s510_s6, %s510_s6 }
  0x4e   : > { %p3744_p7 = scmp.lt.s32.totalorder %s3742_s21, %s3735_s27 }
  0x4f   : > { %p3738_p3 = pnand %p3736_p1, %p4167_p13 }
  0x50   : > { %p3745_p9 = por %p3744_p7, %p3743_p4 }
  0x51   : > { %p3739_p2 = pneg %p3738_p3 }
  0x53   : > { %p3746_p8 = pnand %p3745_p9, %p3739_p2 }
  0x55   : > { %3749 = shalt.err (!%p3746_p8)
}
  0x56   : > { %3504 = dma.hbm_to_vmem [thread:$0]  (!%p4159_p12), %s4623_s12, 16, %s510_s6, [#allocation20]  }
  0x57   : > { %s3999_s16 = smov [#allocation4]   ;;  %s4000_s17 = smov [#allocation9]  }
  0x58   : > { %s398_s29 = sshll.u32 %s3999_s16, 4  ;;  %s426_s23 = sshll.u32 %s4000_s17, 4  ;;  %s399_s29 = int_to_ptr.vmem [resolvable:$true] %s398_s29  ;;  %s427_s23 = int_to_ptr.vmem [resolvable:$true] %s426_s23 }
  0x59   : > { %s3761_s3 = scalar_lea.vmem %s399_s29, 64  ;;  %p3769_p3 = scmp.lt.s32.totalorder %s399_s29, %s399_s29 }
  0x5a   : > { %p3762_p11 = scmp.ne.s32.totalorder %s399_s29, %s3761_s3  ;;  %p3770_p2 = scmp.lt.s32.totalorder %s3761_s3, %s3761_s3 }
  0x5c   : > { %p3764_p0 = pnand %p3762_p11, %p4167_p13  ;;  %p3771_p4 = por %p3770_p2, %p3769_p3 }
  0x5e   : > { %p3765_p1 = pneg %p3764_p0 }
  0x60   : > { %p3772_p7 = pnand %p3771_p4, %p3765_p1 }
  0x62   : > { %3775 = shalt.err (!%p3772_p7)
}
  0x63   : > { %3477 = dma.hbm_to_vmem [thread:$0]  (!%p4159_p12), %s4612_s1, 64, %s399_s29, [#allocation5]  }
  0x64   : > { %s3787_s6 = scalar_lea.vmem %s427_s23, 16  ;;  %s3794_s21 = scalar_lea.vmem %s427_s23, 32 }
  0x65   : > { %p3788_p9 = scmp.ne.s32.totalorder %s427_s23, %s3787_s6  ;;  %p3795_p11 = scmp.lt.s32.totalorder %s427_s23, %s427_s23 }
  0x66   : > { %p3796_p0 = scmp.lt.s32.totalorder %s3794_s21, %s3787_s6 }
  0x67   : > { %p3790_p8 = pnand %p3788_p9, %p4167_p13 }
  0x68   : > { %p3797_p5 = por %p3796_p0, %p3795_p11 }
  0x69   : > { %p3791_p6 = pneg %p3790_p8 }
  0x6b   : > { %p3798_p3 = pnand %p3797_p5, %p3791_p6 }
  0x6d   : > { %3801 = shalt.err (!%p3798_p3)
}
  0x6e   : > { %3483 = dma.hbm_to_vmem [thread:$0]  (!%p4159_p12), %s4616_s5, 16, %s427_s23, [#allocation8]  }
  0x6f   : > { %s4001_s16 = smov [#allocation12]   ;;  %s4002_s17 = smov [#allocation15]  }
  0x70   : > { %s450_s29 = sshll.u32 %s4001_s16, 4  ;;  %s474_s3 = sshll.u32 %s4002_s17, 4  ;;  %s451_s29 = int_to_ptr.vmem [resolvable:$true] %s450_s29  ;;  %s475_s3 = int_to_ptr.vmem [resolvable:$true] %s474_s3 }
  0x71   : > { %s3813_s20 = scalar_lea.vmem %s451_s29, 16  ;;  %s3820_s27 = scalar_lea.vmem %s451_s29, 32 }
  0x72   : > { %p3814_p1 = scmp.ne.s32.totalorder %s451_s29, %s3813_s20  ;;  %p3821_p5 = scmp.lt.s32.totalorder %s451_s29, %s451_s29 }
  0x73   : > { %p3822_p6 = scmp.lt.s32.totalorder %s3820_s27, %s3813_s20 }
  0x74   : > { %p3816_p2 = pnand %p3814_p1, %p4167_p13 }
  0x75   : > { %p3823_p7 = por %p3822_p6, %p3821_p5 }
  0x76   : > { %p3817_p4 = pneg %p3816_p2 }
  0x78   : > { %p3824_p9 = pnand %p3823_p7, %p3817_p4 }
  0x7a   : > { %3827 = shalt.err (!%p3824_p9)
}
  0x7b   : > { %3489 = dma.hbm_to_vmem [thread:$0]  (!%p4159_p12), %s4618_s7, 16, %s451_s29, [#allocation11]  }
  0x7c   : > { %s3839_s21 = scalar_lea.vmem %s475_s3, 16  ;;  %s3846_s18 = scalar_lea.vmem %s475_s3, 32 }
  0x7d   : > { %p3840_p8 = scmp.ne.s32.totalorder %s475_s3, %s3839_s21  ;;  %p3847_p3 = scmp.lt.s32.totalorder %s475_s3, %s475_s3 }
  0x7e   : > { %p3848_p1 = scmp.lt.s32.totalorder %s3846_s18, %s3839_s21 }
  0x7f   : > { %p3842_p11 = pnand %p3840_p8, %p4167_p13 }
  0x80   : > { %p3849_p2 = por %p3848_p1, %p3847_p3 }
  0x81   : > { %p3843_p0 = pneg %p3842_p11 }
  0x83   : > { %p3850_p5 = pnand %p3849_p2, %p3843_p0 }
  0x85   : > { %3853 = shalt.err (!%p3850_p5)
}
  0x86   : > { %3495 = dma.hbm_to_vmem [thread:$0]  (!%p4159_p12), %s4620_s9, 16, %s475_s3, [#allocation14]  }
  0x87   : > { %s4003_s29 = smov [#allocation18]   ;;  %s4004_s20 = smov [#allocation21]  }
  0x88   : > { %s498_s17 = sshll.u32 %s4003_s29, 4  ;;  %s523_s27 = sshll.u32 %s4004_s20, 4  ;;  %s499_s17 = int_to_ptr.vmem [resolvable:$true] %s498_s17  ;;  %s524_s27 = int_to_ptr.vmem [resolvable:$true] %s523_s27 }
  0x89   : > { %s3865_s6 = scalar_lea.vmem %s499_s17, 16  ;;  %s3872_s23 = scalar_lea.vmem %s499_s17, 32 }
  0x8a   : > { %p3866_p4 = scmp.ne.s32.totalorder %s499_s17, %s3865_s6  ;;  %p3873_p9 = scmp.lt.s32.totalorder %s499_s17, %s499_s17 }
  0x8b   : > { %p3874_p8 = scmp.lt.s32.totalorder %s3872_s23, %s3865_s6 }
  0x8c   : > { %p3868_p6 = pnand %p3866_p4, %p4167_p13 }
  0x8d   : > { %p3875_p11 = por %p3874_p8, %p3873_p9 }
  0x8e   : > { %p3869_p7 = pneg %p3868_p6 }
  0x90   : > { %p3876_p0 = pnand %p3875_p11, %p3869_p7 }
  0x92   : > { %3879 = shalt.err (!%p3876_p0)
}
  0x93   : > { %3501 = dma.hbm_to_vmem [thread:$0]  (!%p4159_p12), %s4622_s11, 16, %s499_s17, [#allocation17]  }
  0x94   : > { %s3891_s18 = scalar_lea.vmem %s524_s27, 16  ;;  %s3898_s25 = scalar_lea.vmem %s524_s27, 32 }
  0x95   : > { %p3892_p3 = scmp.ne.s32.totalorder %s524_s27, %s3891_s18  ;;  %p3899_p5 = scmp.lt.s32.totalorder %s524_s27, %s524_s27 }
  0x96   : > { %p3900_p4 = scmp.lt.s32.totalorder %s3898_s25, %s3891_s18 }
  0x97   : > { %p3894_p1 = pnand %p3892_p3, %p4167_p13 }
  0x98   : > { %p3901_p6 = por %p3900_p4, %p3899_p5 }
  0x99   : > { %p3895_p2 = pneg %p3894_p1 }
  0x9b   : > { %p3902_p9 = pnand %p3901_p6, %p3895_p2 }
  0x9d   : > { %3905 = shalt.err (!%p3902_p9)
}
  0x9e   : > { %3507 = dma.hbm_to_vmem [thread:$0]  (!%p4159_p12), %s4625_s14, 16, %s524_s27, [#allocation20]  }
  0x9f   : > { %543 = sbr.rel (%p4151_p10) target bundleno = 4930 (0x1342), region = 80  ;;  %p4650_p7 = scmp.eq.s32.totalorder (!%p4151_p10), %s4123_s22, 0 }
  0xa4   : > { %3949 = dma.done.wait (%p4650_p7), [#allocation5], 64   ;;  %p4651_p13 = pmov %p4650_p7 }
  0xa5   : > { %p4652_p8 = pmov %p4650_p7 }
  0xa6   : > { %3951 = vsyncadd (%p4651_p13), [#allocation5], 4294967232 }
  0xa7   : > { %3953 = dma.done.wait (%p4652_p8), [#allocation8], 32   ;;  %p4653_p11 = pmov %p4650_p7 }
  0xa8   : > { %p4654_p0 = pmov %p4650_p7 }
  0xa9   : > { %3955 = vsyncadd (%p4653_p11), [#allocation8], 4294967264 }
  0xaa   : > { %3957 = dma.done.wait (%p4654_p0), [#allocation11], 528   ;;  %p4655_p12 = pmov %p4654_p0 }
  0xab   : > { %p4656_p10 = pmov %p4654_p0 }
  0xac   : > { %3959 = vsyncadd (%p4655_p12), [#allocation11], 4294966768 }
  0xad   : > { %3961 = dma.done.wait (%p4656_p10), [#allocation14], 528   ;;  %p4657_p3 = pmov %p4654_p0 }
  0xae   : > { %p4658_p1 = pmov %p4654_p0 }
  0xaf   : > { %3963 = vsyncadd (%p4657_p3), [#allocation14], 4294966768 }
  0xb0   : > { %3965 = dma.done.wait (%p4658_p1), [#allocation17], 528   ;;  %p4659_p2 = pmov %p4654_p0 }
  0xb1   : > { %p4660_p5 = pmov %p4654_p0 }
  0xb2   : > { %3967 = vsyncadd (%p4659_p2), [#allocation17], 4294966768 }
  0xb3   : > { %3969 = dma.done.wait (%p4660_p5), [#allocation20], 32   ;;  %p4661_p4 = pmov %p4654_p0 }
  0xb4   : > { %p629_p6 = scmp.lt.s32.totalorder %s4123_s22, 1  ;;  %v4005_v0 = vmov 0.0   ;;  %vm4006_vm0 = vmmov 0   ;;  %vm646_vm1 = vcmask 1043456   ;;  %vm642_vm2 = vcmask 31744   ;;  %v4302_v3 = vld [vmem:[%s4613_s2 + $0x18] sm:$0xff] }
  0xb5   : > { %3971 = vsyncadd (%p4661_p4), [#allocation20], 4294967264  ;;  %3215 = vmatprep.subr.mxu1 %v4005_v0  ;;  %3217 = vmatprep.mubr.msk.f32.mxu1 %vm4006_vm0, %v4005_v0  ;;  %v634_v1 = vld [vmem:[#allocation4] sm:$0xf]  ;;  %v4318_v5 = vld [vmem:[%s4613_s2 + $0x8] sm:$0xff]  ;;  %vm800_vm3 = vcmask 253952  }
  0xb6   : > { %s630_s24 = scalar_select %p629_p6, %s4123_s22, 1  ;;  %3231 = vmatprep.subr.mxu0 %v4005_v0  ;;  %3239 = vmatprep.mubr.msk.f32.mxu0 %vm4006_vm0, %v4005_v0  ;;  %v4309_v4 = vld [vmem:[%s4613_s2 + $0x10] sm:$0xff]  ;;  %v4327_v6 = vld [vmem:[%s4613_s2] sm:$0xff]  ;;  %vm724_vm4 = vcmask 261120   ;;  %vm880_vm5 = vcmask 254977   ;;  %vm961_vm6 = vcmask 256002  }
  0xb7   : > { %3216 = vmatpush3.msk.msra.mxu1 %vm646_vm1, %v634_v1  ;;  %3232 = vmatpush3.msra.mxu0 %v4302_v3  ;;  %v3081_v9 = vld [vmem:[#allocation7] ss:$0 sm:$0xff]  ;;  %vm1042_vm7 = vcmask 257027   ;;  %vm1123_vm8 = vcmask 258052   ;;  %vm1204_vm9 = vcmask 259077   ;;  %vm1285_vm10 = vcmask 260102  }
  0xb8   : > { %s3080_s30 = sshll.u32 %s630_s24, 3  ;;  %3220 = vmatprep.subr.mxu1 %v4005_v0  ;;  %3233 = vmatprep.subr.mxu0 %v4005_v0  ;;  %v1372_v51 = vld [vmem:[%s4615_s4 + $0x18] sm:$0xff]  ;;  %v1371_v52 = vld [vmem:[%s4615_s4 + $0x10] sm:$0xff]  ;;  %v1370_v53 = vld [vmem:[%s4615_s4 + $0x8] sm:$0xff]  ;;  %vm1366_vm11 = vcmask 261127   ;;  %s4007_s23 = smov 120  }
  0xb9   : > { %s632_s20 = scalar_lea.vmem %s4611_s0, %s3080_s30  ;;  %3234 = vmatpush3.msra.mxu0 %v4309_v4  ;;  %v1369_v54 = vld [vmem:[%s4615_s4] sm:$0xff]  ;;  %v3091_v61 = vld [vmem:[#allocation9] ss:$0 sm:$0xff]  ;;  %s4008_s21 = smov 96   ;;  %vm1456_vm12 = vcmask 64512   ;;  %vm1788_vm13 = vcmask 130112  }
  0xba   : > { %v633_v2 = vld [vmem:[%s632_s20] sm:$0xff]  ;;  %3235 = vmatprep.subr.mxu0 %v4005_v0  ;;  %s4009_s3 = smov 80   ;;  %s4010_s18 = smov 88   ;;  %vm1959_vm14 = vcmask 195712   ;;  %vm2130_vm15 = vcmask 261312   ;;  %vm2305_vm1 = vcmask 130048  }
  0xbb   : > { %3218 = vmatmul.mubr.msk.f32.vlgmr.msra.gmra.mxu1 %vm642_vm2, %v633_v2  ;;  %3236 = vmatpush3.msra.mxu0 %v4318_v5  ;;  %s4011_s25 = smov 72   ;;  %s4012_s16 = smov 112   ;;  %vm2637_vm2 = vcmask 261248  }
  0xbc   : > { %3221 = vmatpush3.msra.mxu1 %v4302_v3  ;;  %3228 = vmatprep.mubr.msk.f32.mxu1 %vm4006_vm0, %v4005_v0  ;;  %s4013_s29 = smov 104   ;;  %s4014_s24 = smov 56  }
  0xbd   : > { %3222 = vmatprep.subr.mxu1 %v4005_v0  ;;  %3237 = vmatprep.subr.mxu0 %v4005_v0  ;;  %s4015_s30 = smov 64   ;;  %s4016_s26 = smov 48  }
  0xbe   : > { %3223 = vmatpush3.msra.mxu1 %v4309_v4  ;;  %3238 = vmatpush3.msra.mxu0 %v4327_v6  ;;  %s4017_s17 = smov 40   ;;  %s4018_s20 = smov 8  }
  0xbf   : > { %3224 = vmatprep.subr.mxu1 %v4005_v0  ;;  %3253 = vmatprep.subr.mxu0 %v4005_v0  ;;  %s4019_s27 = smov 16   ;;  %s4020_s6 = smov 24  }
  0xc0   : > { %3225 = vmatpush3.msra.mxu1 %v4318_v5  ;;  %p4662_p7 = scmp.ne.s32.totalorder %s4642_s28, 0 }
  0xc1   : > { %3226 = vmatprep.subr.mxu1 %v4005_v0 }
  0xc2   : > { %3227 = vmatpush3.msra.mxu1 %v4327_v6 }
  0xc3   : > { %3229 = vmatmul.mubr.f32.vlgmr.msra.gmra.mxu1 %v4005_v0  ;;  %3242 = vmatprep.subr.mxu1 %v4005_v0 }
  0xc4   : > { %3243 = vmatpush3.msra.mxu1 %v4302_v3  ;;  %3250 = vmatprep.mubr.msk.f32.mxu1 %vm4006_vm0, %v4005_v0 }
  0xc5   : > { %3244 = vmatprep.subr.mxu1 %v4005_v0 }
  0xc6   : > { %3245 = vmatpush3.msra.mxu1 %v4309_v4 }
  0xc7   : > { %3246 = vmatprep.subr.mxu1 %v4005_v0 }
  0xc8   : > { %3247 = vmatpush3.msra.mxu1 %v4318_v5 }
  0xc9   : > { %3248 = vmatprep.subr.mxu1 %v4005_v0 }
  0xca   : > { %3249 = vmatpush3.msra.mxu1 %v4327_v6 }
  0xcb   : > { %3264 = vmatprep.subr.mxu1 %v4005_v0 }
 0x17b   : > { %v716_v7 = vpop.f32.mrf.mxu1 }
 0x17c   : > { %v4349_v10 = vadd.f32 %v3081_v9, %v716_v7 }
 0x17d   : > { %v3219_v8 = vpop.f32.mrf.mxu1 }
 0x183   : > { %v794_v11 = vpop.f32.mrf.mxu1 }
 0x184   : > { %v798_v12 = vadd.f32 %v794_v11, %v4349_v10 }
 0x185   : > { %v3230_v13 = vpop.f32.mrf.mxu1 }
 0x186   : > { %v799_v14 = vmax.f32 %v798_v12, 0.0 }
 0x188   : > { %801 = vst.msk [vmem:[#allocation2] sm:$0x1] %vm800_vm3, %v799_v14  ;;  %3240 = vmatmul.mubr.msk.f32.vlgmr.msra.gmra.mxu0 %vm724_vm4, %v799_v14 }
 0x189   : > { %3254 = vmatpush3.msra.mxu0 %v4302_v3  ;;  %3261 = vmatprep.mubr.msk.f32.mxu0 %vm4006_vm0, %v4005_v0 }
 0x18a   : > { %3255 = vmatprep.subr.mxu0 %v4005_v0 }
 0x18b   : > { %3256 = vmatpush3.msra.mxu0 %v4309_v4 }
 0x18c   : > { %3257 = vmatprep.subr.mxu0 %v4005_v0 }
 0x18d   : > { %3258 = vmatpush3.msra.mxu0 %v4318_v5 }
 0x18e   : > { %3259 = vmatprep.subr.mxu0 %v4005_v0 }
 0x18f   : > { %3260 = vmatpush3.msra.mxu0 %v4327_v6 }
 0x190   : > { %3275 = vmatprep.subr.mxu0 %v4005_v0 }
 0x248   : > { %v871_v15 = vpop.f32.mrf.mxu0 }
 0x249   : > { %v876_v16 = vrot.slane %v871_v15, 7 }
 0x24a   : > { %v3241_v17 = vpop.f32.mrf.mxu0 }
 0x24b   : > { %v878_v18 = vadd.f32 %v876_v16, %v4349_v10 }
 0x24d   : > { %v879_v19 = vmax.f32 %v878_v18, 0.0 }
 0x24f   : > { %881 = vst.msk [vmem:[#allocation2] sm:$0x2] %vm880_vm5, %v879_v19  ;;  %v883_v20 = vrot.slane %v879_v19, 1 }
 0x251   : > { %3251 = vmatmul.mubr.msk.f32.vlgmr.msra.gmra.mxu1 %vm724_vm4, %v883_v20 }
 0x252   : > { %3265 = vmatpush3.msra.mxu1 %v4302_v3  ;;  %3272 = vmatprep.mubr.msk.f32.mxu1 %vm4006_vm0, %v4005_v0 }
 0x253   : > { %3266 = vmatprep.subr.mxu1 %v4005_v0 }
 0x254   : > { %3267 = vmatpush3.msra.mxu1 %v4309_v4 }
 0x255   : > { %3268 = vmatprep.subr.mxu1 %v4005_v0 }
 0x256   : > { %3269 = vmatpush3.msra.mxu1 %v4318_v5 }
 0x257   : > { %3270 = vmatprep.subr.mxu1 %v4005_v0 }
 0x258   : > { %3271 = vmatpush3.msra.mxu1 %v4327_v6 }
 0x259   : > { %3286 = vmatprep.subr.mxu1 %v4005_v0 }
 0x311   : > { %v952_v21 = vpop.f32.mrf.mxu1 }
 0x312   : > { %v957_v22 = vrot.slane %v952_v21, 6 }
 0x313   : > { %v3252_v23 = vpop.f32.mrf.mxu1 }
 0x314   : > { %v959_v24 = vadd.f32 %v957_v22, %v4349_v10 }
 0x316   : > { %v960_v25 = vmax.f32 %v959_v24, 0.0 }
 0x318   : > { %962 = vst.msk [vmem:[#allocation2] sm:$0x4] %vm961_vm6, %v960_v25  ;;  %v964_v26 = vrot.slane %v960_v25, 2 }
 0x31a   : > { %3262 = vmatmul.mubr.msk.f32.vlgmr.msra.gmra.mxu0 %vm724_vm4, %v964_v26 }
 0x31b   : > { %3276 = vmatpush3.msra.mxu0 %v4302_v3  ;;  %3283 = vmatprep.mubr.msk.f32.mxu0 %vm4006_vm0, %v4005_v0 }
 0x31c   : > { %3277 = vmatprep.subr.mxu0 %v4005_v0 }
 0x31d   : > { %3278 = vmatpush3.msra.mxu0 %v4309_v4 }
 0x31e   : > { %3279 = vmatprep.subr.mxu0 %v4005_v0 }
 0x31f   : > { %3280 = vmatpush3.msra.mxu0 %v4318_v5 }
 0x320   : > { %3281 = vmatprep.subr.mxu0 %v4005_v0 }
 0x321   : > { %3282 = vmatpush3.msra.mxu0 %v4327_v6 }
 0x322   : > { %3297 = vmatprep.subr.mxu0 %v4005_v0 }
 0x3da   : > { %v1033_v27 = vpop.f32.mrf.mxu0 }
 0x3db   : > { %v1038_v28 = vrot.slane %v1033_v27, 5 }
 0x3dc   : > { %v3263_v29 = vpop.f32.mrf.mxu0 }
 0x3dd   : > { %v1040_v30 = vadd.f32 %v1038_v28, %v4349_v10 }
 0x3df   : > { %v1041_v31 = vmax.f32 %v1040_v30, 0.0 }
 0x3e1   : > { %1043 = vst.msk [vmem:[#allocation2] sm:$0x8] %vm1042_vm7, %v1041_v31  ;;  %v1045_v32 = vrot.slane %v1041_v31, 3 }
 0x3e3   : > { %3273 = vmatmul.mubr.msk.f32.vlgmr.msra.gmra.mxu1 %vm724_vm4, %v1045_v32 }
 0x3e4   : > { %3287 = vmatpush3.msra.mxu1 %v4302_v3  ;;  %3294 = vmatprep.mubr.msk.f32.mxu1 %vm4006_vm0, %v4005_v0 }
 0x3e5   : > { %3288 = vmatprep.subr.mxu1 %v4005_v0 }
 0x3e6   : > { %3289 = vmatpush3.msra.mxu1 %v4309_v4 }
 0x3e7   : > { %3290 = vmatprep.subr.mxu1 %v4005_v0 }
 0x3e8   : > { %3291 = vmatpush3.msra.mxu1 %v4318_v5 }
 0x3e9   : > { %3292 = vmatprep.subr.mxu1 %v4005_v0 }
 0x3ea   : > { %3293 = vmatpush3.msra.mxu1 %v4327_v6 }
 0x3eb   : > { %3308 = vmatprep.subr.mxu1 %v4005_v0 }
 0x4a3   : > { %v1114_v33 = vpop.f32.mrf.mxu1 }
 0x4a4   : > { %v1119_v34 = vrot.slane %v1114_v33, 4 }
 0x4a5   : > { %v3274_v35 = vpop.f32.mrf.mxu1 }
 0x4a6   : > { %v1121_v36 = vadd.f32 %v1119_v34, %v4349_v10 }
 0x4a8   : > { %v1122_v37 = vmax.f32 %v1121_v36, 0.0 }
 0x4aa   : > { %1124 = vst.msk [vmem:[#allocation2] sm:$0x10] %vm1123_vm8, %v1122_v37  ;;  %v1126_v38 = vrot.slane %v1122_v37, 4 }
 0x4ac   : > { %3284 = vmatmul.mubr.msk.f32.vlgmr.msra.gmra.mxu0 %vm724_vm4, %v1126_v38 }
 0x4ad   : > { %3298 = vmatpush3.msra.mxu0 %v4302_v3  ;;  %3305 = vmatprep.mubr.msk.f32.mxu0 %vm4006_vm0, %v4005_v0 }
 0x4ae   : > { %3299 = vmatprep.subr.mxu0 %v4005_v0 }
 0x4af   : > { %3300 = vmatpush3.msra.mxu0 %v4309_v4 }
 0x4b0   : > { %3301 = vmatprep.subr.mxu0 %v4005_v0 }
 0x4b1   : > { %3302 = vmatpush3.msra.mxu0 %v4318_v5 }
 0x4b2   : > { %3303 = vmatprep.subr.mxu0 %v4005_v0 }
 0x4b3   : > { %3304 = vmatpush3.msra.mxu0 %v4327_v6 }
 0x4b4   : > { %3319 = vmatprep.subr.mxu0 %v4005_v0 }
 0x56c   : > { %v1195_v39 = vpop.f32.mrf.mxu0 }
 0x56d   : > { %v1200_v40 = vrot.slane %v1195_v39, 3 }
 0x56e   : > { %v3285_v41 = vpop.f32.mrf.mxu0 }
 0x56f   : > { %v1202_v42 = vadd.f32 %v1200_v40, %v4349_v10 }
 0x571   : > { %v1203_v43 = vmax.f32 %v1202_v42, 0.0 }
 0x573   : > { %1205 = vst.msk [vmem:[#allocation2] sm:$0x20] %vm1204_vm9, %v1203_v43  ;;  %v1207_v44 = vrot.slane %v1203_v43, 5 }
 0x575   : > { %3295 = vmatmul.mubr.msk.f32.vlgmr.msra.gmra.mxu1 %vm724_vm4, %v1207_v44 }
 0x576   : > { %3316 = vmatprep.mubr.msk.f32.mxu1 %vm4006_vm0, %v4005_v0  ;;  %3309 = vmatpush3.msra.mxu1 %v1372_v51 }
 0x577   : > { %3310 = vmatprep.subr.mxu1 %v4005_v0 }
 0x578   : > { %3311 = vmatpush3.msra.mxu1 %v1371_v52 }
 0x579   : > { %3312 = vmatprep.subr.mxu1 %v4005_v0 }
 0x57a   : > { %3313 = vmatpush3.msra.mxu1 %v1370_v53 }
 0x57b   : > { %3314 = vmatprep.subr.mxu1 %v4005_v0 }
 0x57c   : > { %3315 = vmatpush3.msra.mxu1 %v1369_v54 }
 0x57d   : > { %3329 = vmatprep.subr.mxu1 %v4005_v0 }
 0x635   : > { %v1276_v45 = vpop.f32.mrf.mxu1 }
 0x636   : > { %v1281_v46 = vrot.slane %v1276_v45, 2 }
 0x637   : > { %v3296_v47 = vpop.f32.mrf.mxu1 }
 0x638   : > { %v1283_v48 = vadd.f32 %v1281_v46, %v4349_v10 }
 0x63a   : > { %v1284_v49 = vmax.f32 %v1283_v48, 0.0 }
 0x63c   : > { %1286 = vst.msk [vmem:[#allocation2] sm:$0x40] %vm1285_vm10, %v1284_v49  ;;  %v1288_v50 = vrot.slane %v1284_v49, 6 }
 0x63e   : > { %3306 = vmatmul.mubr.msk.f32.vlgmr.msra.gmra.mxu0 %vm724_vm4, %v1288_v50 }
 0x63f   : > { %3321 = vmatprep.mubr.msk.f32.mxu0 %vm4006_vm0, %v4005_v0 }
 0x6fe   : > { %v1357_v55 = vpop.f32.mrf.mxu0 }
 0x6ff   : > { %v1362_v56 = vrot.slane %v1357_v55, 1 }
 0x700   : > { %v3307_v57 = vpop.f32.mrf.mxu0 }
 0x701   : > { %v1364_v58 = vadd.f32 %v1362_v56, %v4349_v10 }
 0x703   : > { %v1365_v59 = vmax.f32 %v1364_v58, 0.0 }
 0x705   : > { %1367 = vst.msk [vmem:[#allocation2] sm:$0x80] %vm1366_vm11, %v1365_v59 }
 0x70c   : > { %v1368_v60 = vld [vmem:[#allocation2] sm:$0xff] }
 0x70d   : > { %3317 = vmatmul.mubr.msk.f32.vlgmr.msra.gmra.mxu1 %vm724_vm4, %v1368_v60 }
 0x70e   : > { %3331 = vmatprep.mubr.msk.f32.mxu1 %vm4006_vm0, %v4005_v0 }
 0x7cd   : > { %v1449_v62 = vpop.f32.mrf.mxu1 }
 0x7ce   : > { %v4439_v63 = vadd.f32 %v3091_v61, %v1449_v62  ;;  %v2136_v61 = vld [vmem:[#allocation10 + $0x18] sm:$0xff]  ;;  %v2135_v62 = vld [vmem:[#allocation10 + $0x10] sm:$0xff] }
 0x7cf   : > { %v3318_v1 = vpop.f32.mrf.mxu1 }
 0x7d0   : > { %1619 = vrot.lane.b32.xlu1 %v4439_v63, %s4007_s23  ;;  %1454 = vrot.lane.b32.xlu0 %v4439_v63, %s4008_s21  ;;  %v2133_v1 = vld [vmem:[#allocation10] sm:$0xff] }
 0x7d4   : > { %1792 = vrot.lane.b32.xlu1 %v4439_v63, %s4009_s3  ;;  %1621 = vrot.lane.b32.xlu0 %v4439_v63, %s4010_s18 }
 0x7d8   : > { %1963 = vrot.lane.b32.xlu1 %v4439_v63, %s4011_s25  ;;  %1790 = vrot.lane.b32.xlu0 %v4439_v63, %s4012_s16 }
 0x7dc   : > { %1961 = vrot.lane.b32.xlu0 %v4439_v63, %s4013_s29 }
 0x842   : > { %v1620_v2 = vpop.permute.xlu1 %1619  ;;  %v1455_v3 = vpop.permute.xlu0 %1454 }
 0x843   : > { %3320 = vmatpush3.xpose.msk.msra.mxu0 %vm1456_vm12, %v1455_v3  ;;  %v2221_v3 = vld [vmem:[#allocation13 + $0x18] sm:$0xff] }
 0x844   : > { %3324 = vmatprep.subr.mxu0 %v4005_v0 }
 0x846   : > { %3322 = vmatmul.mubr.msk.f32.vlgmr.msra.gmra.mxu0 %vm1456_vm12, %v4439_v63  ;;  %v1622_v4 = vpop.permute.xlu0 %1621  ;;  %v1793_v5 = vpop.permute.xlu1 %1792 }
 0x847   : > { %3330 = vmatpush3.xpose.msk.msra.mxu1 %vm1456_vm12, %v1622_v4  ;;  %3326 = vmatprep.mubr.msk.f32.mxu0 %vm4006_vm0, %v4005_v0 }
 0x848   : > { %3339 = vmatprep.subr.mxu1 %v4005_v0 }
 0x84a   : > { %3332 = vmatmul.mubr.msk.f32.vlgmr.msra.gmra.mxu1 %vm1456_vm12, %v1620_v2  ;;  %v1791_v6 = vpop.permute.xlu0 %1790  ;;  %v1964_v7 = vpop.permute.xlu1 %1963 }
 0x84b   : > { %3340 = vmatpush3.xpose.msk.msra.mxu1 %vm1456_vm12, %v1793_v5  ;;  %3341 = vmatprep.mubr.msk.f32.mxu1 %vm4006_vm0, %v4005_v0 }
 0x84c   : > { %3349 = vmatprep.subr.mxu1 %v4005_v0 }
 0x84e   : > { %3342 = vmatmul.mubr.msk.f32.vlgmr.msra.gmra.mxu1 %vm1456_vm12, %v1791_v6  ;;  %v1962_v8 = vpop.permute.xlu0 %1961 }
 0x84f   : > { %3350 = vmatpush3.xpose.msk.msra.mxu1 %vm1456_vm12, %v1964_v7  ;;  %3351 = vmatprep.mubr.msk.f32.mxu1 %vm4006_vm0, %v4005_v0 }
 0x850   : > { %3359 = vmatprep.subr.mxu1 %v4005_v0 }
 0x852   : > { %3352 = vmatmul.mubr.msk.f32.vlgmr.msra.gmra.mxu1 %vm1456_vm12, %v1962_v8 }
 0x853   : > { %3367 = vmatprep.mubr.msk.f32.mxu1 %vm4006_vm0, %v4005_v0  ;;  %3360 = vmatpush3.msra.mxu1 %v2136_v61 }
 0x854   : > { %3361 = vmatprep.subr.mxu1 %v4005_v0 }
 0x855   : > { %3362 = vmatpush3.msra.mxu1 %v2135_v62 }
 0x856   : > { %3363 = vmatprep.subr.mxu1 %v4005_v0 }
 0x906   : > { %v1527_v9 = vpop.f32.mrf.mxu0 }
 0x907   : > { %v1531_v10 = vsel %vm1456_vm12, %v1527_v9, -inf }
 0x908   : > { %1532 = vmax.xlane.f32.xlu1 %v1531_v10  ;;  %v3323_v11 = vpop.f32.mrf.mxu0 }
 0x909   : > { %v2220_v11 = vld [vmem:[#allocation13 + $0x10] sm:$0xff] }
 0x90a   : > { %v1693_v12 = vpop.f32.mrf.mxu1 }
 0x90b   : > { %v1697_v13 = vsel %vm1456_vm12, %v1693_v12, -inf }
 0x90c   : > { %1698 = vmax.xlane.f32.xlu0 %v1697_v13  ;;  %v3333_v14 = vpop.f32.mrf.mxu1  ;;  %v2218_v13 = vld [vmem:[#allocation13] sm:$0xff] }
 0x90d   : > { %v3105_v14 = vld [vmem:[#allocation12] ss:$0 sm:$0xff] }
 0x90e   : > { %v1864_v15 = vpop.f32.mrf.mxu1 }
 0x90f   : > { %v1868_v16 = vsel %vm1456_vm12, %v1864_v15, -inf }
 0x910   : > { %1869 = vmax.xlane.f32.xlu0 %v1868_v16  ;;  %v3343_v17 = vpop.f32.mrf.mxu1 }
 0x912   : > { %v2035_v18 = vpop.f32.mrf.mxu1 }
 0x913   : > { %v2039_v19 = vsel %vm1456_vm12, %v2035_v18, -inf }
 0x914   : > { %2040 = vmax.xlane.f32.xlu1 %v2039_v19  ;;  %v3353_v20 = vpop.f32.mrf.mxu1  ;;  %v3107_v19 = vld [vmem:[#allocation15] ss:$0 sm:$0xff] }
 0x925   : > { %1708 = vrot.lane.b32.xlu1 %v4439_v63, %s4014_s24 }
 0x991   : > { %v1533_v21 = vpop.xlane.xlu1 %1532 }
 0x992   : > { %v1534_v22 = vsub.f32 %v1527_v9, %v1533_v21 }
 0x994   : > { %v1535_v23 = vmul.f32 1.442695, %v1534_v22 }
 0x995   : > { %v1699_v24 = vpop.xlane.xlu0 %1698 }
 0x996   : > { %3596 = vpow2.f32 %v1535_v23  ;;  %v1700_v25 = vsub.f32 %v1693_v12, %v1699_v24  ;;  %v2219_v12 = vld [vmem:[#allocation13 + $0x8] sm:$0xff] }
 0x998   : > { %v1701_v26 = vmul.f32 1.442695, %v1700_v25 }
 0x999   : > { %v1870_v36 = vpop.xlane.xlu0 %1869 }
 0x99a   : > { %3598 = vpow2.f32 %v1701_v26  ;;  %v1871_v37 = vsub.f32 %v1864_v15, %v1870_v36 }
 0x99c   : > { %v1872_v38 = vmul.f32 1.442695, %v1871_v37 }
 0x99d   : > { %v2041_v27 = vpop.xlane.xlu1 %2040 }
 0x99e   : > { %v2042_v28 = vsub.f32 %v2035_v18, %v2041_v27 }
 0x9a0   : > { %v2043_v29 = vmul.f32 1.442695, %v2042_v28 }
 0x9a1   : > { %v1709_v41 = vpop.permute.xlu1 %1708 }
 0x9a2   : > { %3600 = vpow2.f32 %v2043_v29 }
 0x9a3   : > { %v3597_v30 = vpop.eup %3596  ;;  %3602 = vpow2.f32 %v1872_v38 }
 0x9a4   : > { %v1537_v31 = vsel %vm1456_vm12, %v3597_v30, 0.0 }
 0x9a5   : > { %1538 = vadd.xlane.f32.xlu0 %v1537_v31 }
 0x9a7   : > { %v3599_v32 = vpop.eup %3598 }
 0x9a8   : > { %v1703_v33 = vsel %vm1456_vm12, %v3599_v32, 0.0 }
 0x9a9   : > { %1704 = vadd.xlane.f32.xlu1 %v1703_v33 }
 0x9af   : > { %v3601_v34 = vpop.eup %3600 }
 0x9b0   : > { %v2045_v35 = vsel %vm1456_vm12, %v3601_v34, 0.0  ;;  %v3603_v39 = vpop.eup %3602 }
 0x9b1   : > { %2046 = vadd.xlane.f32.xlu1 %v2045_v35  ;;  %v1874_v40 = vsel %vm1456_vm12, %v3603_v39, 0.0 }
 0x9bb   : > { %1542 = vrot.lane.b32.xlu0 %v4439_v63, %s4015_s30 }
 0x9c2   : > { %1879 = vrot.lane.b32.xlu1 %v4439_v63, %s4016_s26 }
 0x9da   : > { %1875 = vadd.xlane.f32.xlu0 %v1874_v40 }
 0x9f0   : > { %2050 = vrot.lane.b32.xlu0 %v4439_v63, %s4017_s17  ;;  %v2134_v63 = vld [vmem:[#allocation10 + $0x8] sm:$0xff] }
 0x9f1   : > { %3364 = vmatpush3.msra.mxu1 %v2134_v63 }
 0x9f2   : > { %3365 = vmatprep.subr.mxu1 %v4005_v0 }
 0x9f3   : > { %3366 = vmatpush3.msra.mxu1 %v2133_v1 }
 0x9f4   : > { %3381 = vmatprep.subr.mxu1 %v4005_v0 }
 0xa2e   : > { %v1539_v42 = vpop.xlane.xlu0 %1538 }
 0xa2f   : > { %3604 = vrcp.f32 %v1539_v42 }
 0xa32   : > { %v1543_v43 = vpop.permute.xlu0 %1542  ;;  %v1705_v44 = vpop.xlane.xlu1 %1704 }
 0xa33   : > { %3606 = vrcp.f32 %v1705_v44  ;;  %3325 = vmatpush3.msra.mxu0 %v1543_v43 }
 0xa34   : > { %3334 = vmatprep.subr.mxu0 %v4005_v0 }
 0xa3a   : > { %v2047_v46 = vpop.xlane.xlu1 %2046 }
 0xa3c   : > { %v3605_v45 = vpop.eup %3604 }
 0xa3d   : > { %v1541_v47 = vmul.f32 %v3605_v45, %v3597_v30 }
 0xa3e   : > { %v1880_v50 = vpop.permute.xlu1 %1879 }
 0xa3f   : > { %3327 = vmatmul.mubr.msk.f32.vlgmr.msra.gmra.mxu0 %vm1456_vm12, %v1541_v47 }
 0xa40   : > { %v3607_v48 = vpop.eup %3606  ;;  %3335 = vmatpush3.msra.mxu0 %v1709_v41  ;;  %3336 = vmatprep.mubr.msk.f32.mxu0 %vm4006_vm0, %v4005_v0 }
 0xa41   : > { %3344 = vmatprep.subr.mxu0 %v4005_v0  ;;  %v1707_v49 = vmul.f32 %v3607_v48, %v3599_v32 }
 0xa43   : > { %3337 = vmatmul.mubr.msk.f32.vlgmr.msra.gmra.mxu0 %vm1456_vm12, %v1707_v49 }
 0xa44   : > { %3345 = vmatpush3.msra.mxu0 %v1880_v50  ;;  %3346 = vmatprep.mubr.msk.f32.mxu0 %vm4006_vm0, %v4005_v0  ;;  %v2643_v50 = vld [vmem:[#allocation16 + $0x18] sm:$0xff] }
 0xa45   : > { %3354 = vmatprep.subr.mxu0 %v4005_v0 }
 0xa63   : > { %v1876_v51 = vpop.xlane.xlu0 %1875 }
 0xa64   : > { %3608 = vrcp.f32 %v1876_v51  ;;  %v2642_v51 = vld [vmem:[#allocation16 + $0x10] sm:$0xff] }
 0xa65   : > { %3610 = vrcp.f32 %v2047_v46 }
 0xa67   : > { %v2051_v55 = vpop.permute.xlu0 %2050 }
 0xa71   : > { %v3609_v52 = vpop.eup %3608 }
 0xa72   : > { %v1878_v53 = vmul.f32 %v3609_v52, %v3603_v39  ;;  %v3611_v54 = vpop.eup %3610  ;;  %v2641_v52 = vld [vmem:[#allocation16 + $0x8] sm:$0xff] }
 0xa73   : > { %v2049_v56 = vmul.f32 %v3611_v54, %v3601_v34 }
 0xa74   : > { %3347 = vmatmul.mubr.msk.f32.vlgmr.msra.gmra.mxu0 %vm1456_vm12, %v1878_v53  ;;  %v2640_v53 = vld [vmem:[#allocation16] sm:$0xff] }
 0xa75   : > { %3355 = vmatpush3.msra.mxu0 %v2051_v55  ;;  %3356 = vmatprep.mubr.msk.f32.mxu0 %vm4006_vm0, %v4005_v0 }
 0xa76   : > { %3370 = vmatprep.subr.mxu0 %v4005_v0 }
 0xa78   : > { %3357 = vmatmul.mubr.msk.f32.vlgmr.msra.gmra.mxu0 %vm1456_vm12, %v2049_v56 }
 0xa79   : > { %3378 = vmatprep.mubr.msk.f32.mxu0 %vm4006_vm0, %v4005_v0  ;;  %3371 = vmatpush3.msra.mxu0 %v2221_v3  ;;  %v2802_v3 = vld [vmem:[%s4624_s13 + $0x18] sm:$0xff] }
 0xa7a   : > { %3372 = vmatprep.subr.mxu0 %v4005_v0 }
 0xa7b   : > { %3373 = vmatpush3.msra.mxu0 %v2220_v11 }
 0xa7c   : > { %3374 = vmatprep.subr.mxu0 %v4005_v0 }
 0xa7d   : > { %3375 = vmatpush3.msra.mxu0 %v2219_v12 }
 0xa7e   : > { %3376 = vmatprep.subr.mxu0 %v4005_v0 }
 0xa7f   : > { %3377 = vmatpush3.msra.mxu0 %v2218_v13 }
 0xa80   : > { %3386 = vmatprep.subr.mxu0 %v4005_v0 }
 0xaff   : > { %v1614_v57 = vpop.f32.mrf.mxu0 }
 0xb00   : > { %1618 = vst.msk [vmem:[#allocation3] sm:$0xff] %vm1456_vm12, %v1614_v57 }
 0xb01   : > { %v3328_v58 = vpop.f32.mrf.mxu0 }
 0xb03   : > { %v1780_v59 = vpop.f32.mrf.mxu0 }
 0xb04   : > { %1785 = vrot.lane.b32.xlu1 %v1780_v59, %s4018_s20 }
 0xb05   : > { %v3338_v60 = vpop.f32.mrf.mxu0 }
 0xb06   : > { %v3115_v60 = vld [vmem:[#allocation18] ss:$0 sm:$0xff] }
 0xb34   : > { %v1951_v2 = vpop.f32.mrf.mxu0 }
 0xb35   : > { %1956 = vrot.lane.b32.xlu0 %v1951_v2, %s4019_s27  ;;  %v2725_v2 = vld [vmem:[#allocation19] sm:$0x1] }
 0xb36   : > { %v3348_v4 = vpop.f32.mrf.mxu0 }
 0xb37   : > { %v2801_v4 = vld [vmem:[%s4624_s13 + $0x10] sm:$0xff] }
 0xb38   : > { %v2122_v5 = vpop.f32.mrf.mxu0 }
 0xb39   : > { %2127 = vrot.lane.b32.xlu1 %v2122_v5, %s4020_s6  ;;  %v2800_v5 = vld [vmem:[%s4624_s13 + $0x8] sm:$0xff] }
 0xb3a   : > { %v3358_v6 = vpop.f32.mrf.mxu0 }
 0xb3b   : > { %v2799_v6 = vld [vmem:[%s4624_s13] sm:$0xff] }
 0xb76   : > { %v1786_v7 = vpop.permute.xlu1 %1785 }
 0xb77   : > { %1789 = vst.msk [vmem:[#allocation3] sm:$0xff] %vm1788_vm13, %v1786_v7 }
 0xba7   : > { %v1957_v8 = vpop.permute.xlu0 %1956 }
 0xba8   : > { %1960 = vst.msk [vmem:[#allocation3] sm:$0xff] %vm1959_vm14, %v1957_v8 }
 0xbab   : > { %v2128_v9 = vpop.permute.xlu1 %2127 }
 0xbac   : > { %2131 = vst.msk [vmem:[#allocation3] sm:$0xff] %vm2130_vm15, %v2128_v9  ;;  %v2803_v9 = vld [vmem:[#allocation21] sm:$0x1] }
 0xbb3   : > { %v2132_v10 = vld [vmem:[#allocation3] sm:$0xff] }
 0xbb4   : > { %3368 = vmatmul.mubr.msk.f32.vlgmr.msra.gmra.mxu1 %vm724_vm4, %v2132_v10 }
 0xbb5   : > { %3383 = vmatprep.mubr.msk.f32.mxu1 %vm4006_vm0, %v4005_v0 }
 0xc74   : > { %v2213_v15 = vpop.f32.mrf.mxu1 }
 0xc75   : > { %v2214_v16 = vadd.f32 %v3105_v14, %v2213_v15 }
 0xc76   : > { %v3369_v17 = vpop.f32.mrf.mxu1 }
 0xc77   : > { %v2217_v18 = vmax.f32 %v2214_v16, 0.0 }
 0xc79   : > { %3379 = vmatmul.mubr.msk.f32.vlgmr.msra.gmra.mxu0 %vm724_vm4, %v2217_v18 }
 0xc7a   : > { %3388 = vmatprep.mubr.msk.f32.mxu0 %vm4006_vm0, %v4005_v0 }
 0xd39   : > { %v2298_v20 = vpop.f32.mrf.mxu0 }
 0xd3a   : > { %v2299_v21 = vadd.f32 %v3107_v19, %v2298_v20 }
 0xd3b   : > { %v3380_v22 = vpop.f32.mrf.mxu0 }
 0xd3c   : > { %2470 = vrot.lane.b32.xlu1 %v2299_v21, %s4009_s3  ;;  %2303 = vrot.lane.b32.xlu0 %v2299_v21, %s4008_s21 }
 0xd40   : > { %2468 = vrot.lane.b32.xlu0 %v2299_v21, %s4012_s16 }
 0xdae   : > { %v2304_v23 = vpop.permute.xlu0 %2303  ;;  %v2471_v24 = vpop.permute.xlu1 %2470 }
 0xdaf   : > { %3382 = vmatpush3.xpose.msk.msra.mxu1 %vm2305_vm1, %v2304_v23 }
 0xdb0   : > { %3391 = vmatprep.subr.mxu1 %v4005_v0 }
 0xdb2   : > { %3384 = vmatmul.mubr.msk.f32.vlgmr.msra.gmra.mxu1 %vm2305_vm1, %v2299_v21  ;;  %v2469_v25 = vpop.permute.xlu0 %2468 }
 0xdb3   : > { %3392 = vmatpush3.xpose.msk.msra.mxu1 %vm2305_vm1, %v2471_v24  ;;  %3393 = vmatprep.mubr.msk.f32.mxu1 %vm4006_vm0, %v4005_v0 }
 0xdb4   : > { %3401 = vmatprep.subr.mxu1 %v4005_v0 }
 0xdb6   : > { %3394 = vmatmul.mubr.msk.f32.vlgmr.msra.gmra.mxu1 %vm2305_vm1, %v2469_v25 }
 0xdb7   : > { %3409 = vmatprep.mubr.msk.f32.mxu1 %vm4006_vm0, %v4005_v0  ;;  %3402 = vmatpush3.msra.mxu1 %v2643_v50 }
 0xdb8   : > { %3403 = vmatprep.subr.mxu1 %v4005_v0 }
 0xdb9   : > { %3404 = vmatpush3.msra.mxu1 %v2642_v51 }
 0xdba   : > { %3405 = vmatprep.subr.mxu1 %v4005_v0 }
 0xdbb   : > { %3406 = vmatpush3.msra.mxu1 %v2641_v52 }
 0xdbc   : > { %3407 = vmatprep.subr.mxu1 %v4005_v0 }
 0xdbd   : > { %3408 = vmatpush3.msra.mxu1 %v2640_v53 }
 0xe72   : > { %v2376_v26 = vpop.f32.mrf.mxu1 }
 0xe73   : > { %v2380_v27 = vsel %vm1456_vm12, %v2376_v26, -inf }
 0xe74   : > { %2381 = vmax.xlane.f32.xlu1 %v2380_v27  ;;  %v3385_v28 = vpop.f32.mrf.mxu1 }
 0xe76   : > { %v2542_v29 = vpop.f32.mrf.mxu1 }
 0xe77   : > { %v2546_v30 = vsel %vm1456_vm12, %v2542_v29, -inf }
 0xe78   : > { %2547 = vmax.xlane.f32.xlu0 %v2546_v30  ;;  %v3395_v31 = vpop.f32.mrf.mxu1 }
 0xefd   : > { %v2382_v32 = vpop.xlane.xlu1 %2381 }
 0xefe   : > { %v2383_v33 = vsub.f32 %v2376_v26, %v2382_v32 }
 0xf00   : > { %v2384_v34 = vmul.f32 1.442695, %v2383_v33 }
 0xf01   : > { %v2548_v35 = vpop.xlane.xlu0 %2547 }
 0xf02   : > { %3612 = vpow2.f32 %v2384_v34  ;;  %v2549_v36 = vsub.f32 %v2542_v29, %v2548_v35 }
 0xf04   : > { %v2550_v37 = vmul.f32 1.442695, %v2549_v36 }
 0xf06   : > { %3614 = vpow2.f32 %v2550_v37 }
 0xf0f   : > { %v3613_v38 = vpop.eup %3612 }
 0xf10   : > { %v2386_v39 = vsel %vm1456_vm12, %v3613_v38, 0.0 }
 0xf11   : > { %2387 = vadd.xlane.f32.xlu0 %v2386_v39 }
 0xf13   : > { %v3615_v40 = vpop.eup %3614 }
 0xf14   : > { %v2552_v41 = vsel %vm1456_vm12, %v3615_v40, 0.0 }
 0xf15   : > { %2553 = vadd.xlane.f32.xlu1 %v2552_v41 }
 0xf26   : > { %2557 = vrot.lane.b32.xlu1 %v2299_v21, %s4016_s26  ;;  %s3119_s26 = sshll.u32 %s4123_s22, 4  ;;  %s4021_s22 = smov [#allocation22]  }
 0xf27   : > { %2391 = vrot.lane.b32.xlu0 %v2299_v21, %s4015_s30  ;;  %s627_s30 = sand.u32 1, %s3982_s19   ;;  %s4576_s23 = scalar_lea.hbm %s4626_s15, %s3119_s26 }
 0xf28   : > { %s628_s17 = scalar_lea.vmem [#allocation22], %s627_s30  ;;  %s2880_s21 = scalar_lea.sflag [#allocation6], %s627_s30 }
 0xf29   : > { %s2892_s20 = sshll.u32 %s628_s17, 4  ;;  %s3910_s18 = sshll.u32 %s4021_s22, 4  ;;  %s2893_s20 = int_to_ptr.vmem [resolvable:$true] %s2892_s20  ;;  %s3911_s18 = int_to_ptr.vmem [resolvable:$false] %s3910_s18 }
 0xf2a   : > { %s3906_s3 = scalar_lea.vmem %s2893_s20, 16  ;;  %s3912_s25 = scalar_lea.vmem %s3911_s18, 32 }
 0xf2b   : > { %p3907_p9 = scmp.ne.s32.totalorder %s2893_s20, %s3906_s3  ;;  %p3913_p11 = scmp.lt.s32.totalorder %s2893_s20, %s3911_s18 }
 0xf2c   : > { %p3914_p0 = scmp.lt.s32.totalorder %s3912_s25, %s3906_s3 }
 0xf2d   : > { %p3908_p13 = pnand %p3907_p9, %p4662_p7 }
 0xf2e   : > { %p3915_p12 = por %p3914_p0, %p3913_p11 }
 0xf2f   : > { %p3909_p8 = pneg %p3908_p13 }
 0xf31   : > { %p3916_p10 = pnand %p3915_p12, %p3909_p8 }
 0xf9a   : > { %v2388_v42 = vpop.xlane.xlu0 %2387 }
 0xf9b   : > { %3616 = vrcp.f32 %v2388_v42 }
 0xf9e   : > { %v2554_v43 = vpop.xlane.xlu1 %2553  ;;  %v2392_v44 = vpop.permute.xlu0 %2391 }
 0xf9f   : > { %3618 = vrcp.f32 %v2554_v43  ;;  %3387 = vmatpush3.msra.mxu0 %v2392_v44 }
 0xfa0   : > { %3396 = vmatprep.subr.mxu0 %v4005_v0 }
 0xfa2   : > { %v2558_v47 = vpop.permute.xlu1 %2557 }
 0xfa8   : > { %v3617_v45 = vpop.eup %3616 }
 0xfa9   : > { %v2390_v46 = vmul.f32 %v3617_v45, %v3613_v38 }
 0xfab   : > { %3389 = vmatmul.mubr.msk.f32.vlgmr.msra.gmra.mxu0 %vm1456_vm12, %v2390_v46 }
 0xfac   : > { %v3619_v48 = vpop.eup %3618  ;;  %3397 = vmatpush3.msra.mxu0 %v2558_v47  ;;  %3398 = vmatprep.mubr.msk.f32.mxu0 %vm4006_vm0, %v4005_v0 }
 0xfad   : > { %v2556_v49 = vmul.f32 %v3619_v48, %v3615_v40  ;;  %3412 = vmatprep.subr.mxu0 %v4005_v0 }
 0xfaf   : > { %3399 = vmatmul.mubr.msk.f32.vlgmr.msra.gmra.mxu0 %vm1456_vm12, %v2556_v49 }
 0xfb0   : > { %3414 = vmatprep.mubr.msk.f32.mxu0 %vm4006_vm0, %v4005_v0 }
0x106b   : > { %v2463_v54 = vpop.f32.mrf.mxu0 }
0x106c   : > { %2467 = vst.msk [vmem:[#allocation3] sm:$0xff] %vm2305_vm1, %v2463_v54 }
0x106d   : > { %v3390_v55 = vpop.f32.mrf.mxu0 }
0x106f   : > { %v2629_v56 = vpop.f32.mrf.mxu0 }
0x1070   : > { %2634 = vrot.lane.b32.xlu1 %v2629_v56, %s4019_s27 }
0x1071   : > { %v3400_v57 = vpop.f32.mrf.mxu0 }
0x10e2   : > { %v2635_v58 = vpop.permute.xlu1 %2634 }
0x10e3   : > { %2638 = vst.msk [vmem:[#allocation3] sm:$0xff] %vm2637_vm2, %v2635_v58 }
0x10ea   : > { %v2639_v59 = vld [vmem:[#allocation3] sm:$0xff] }
0x10eb   : > { %3410 = vmatmul.mubr.msk.f32.vlgmr.msra.gmra.mxu1 %vm724_vm4, %v2639_v59 }
0x11ab   : > { %v2720_v61 = vpop.f32.mrf.mxu1 }
0x11ac   : > { %v2721_v62 = vadd.f32 %v3115_v60, %v2720_v61 }
0x11ad   : > { %v3411_v63 = vpop.f32.mrf.mxu1 }
0x11ae   : > { %v2724_v1 = vmax.f32 %v2721_v62, 0.0 }
0x11b0   : > { %3413 = vmatpush3.msra.mxu0 %v2724_v1 }
0x11b1   : > { %3415 = vmatmul.mubr.msk.f32.vlgmr.msra.gmra.mxu0 %vm1456_vm12, %v2725_v2  ;;  %3417 = vmatprep.subr.mxu0 %v4005_v0 }
0x11b2   : > { %3418 = vmatpush3.msra.mxu0 %v2802_v3  ;;  %3425 = vmatprep.mubr.msk.f32.mxu0 %vm4006_vm0, %v4005_v0  ;;  %vm2877_vm0 = vcmask 16384  }
0x11b3   : > { %3419 = vmatprep.subr.mxu0 %v4005_v0 }
0x11b4   : > { %3420 = vmatpush3.msra.mxu0 %v2801_v4 }
0x11b5   : > { %3421 = vmatprep.subr.mxu0 %v4005_v0 }
0x11b6   : > { %3422 = vmatpush3.msra.mxu0 %v2800_v5 }
0x11b7   : > { %3423 = vmatprep.subr.mxu0 %v4005_v0 }
0x11b8   : > { %3424 = vmatpush3.msra.mxu0 %v2799_v6 }
0x1271   : > { %v2795_v7 = vpop.f32.mrf.mxu0 }
0x1272   : > { %3426 = vmatmul.mubr.msk.f32.vlgmr.msra.gmra.mxu0 %vm724_vm4, %v2795_v7 }
0x1273   : > { %v3416_v8 = vpop.f32.mrf.mxu0 }
0x1332   : > { %v2873_v10 = vpop.f32.mrf.mxu0 }
0x1333   : > { %v2874_v11 = vadd.f32 %v2873_v10, %v2803_v9 }
0x1334   : > { %v3427_v0 = vpop.f32.mrf.mxu0 }
0x1335   : > { %2878 = vst.msk [vmem:[%s628_s17] sm:$0x1] %vm2877_vm0, %v2874_v11 }
0x1336   : > { %3919 = shalt.err (!%p3916_p10)
}
0x1337   : > { %s3920_s16 = scalar_lea.hbm %s4576_s23, 16  ;;  %s3924_s30 = scalar_lea.hbm %s4626_s15, 32 }
0x1338   : > { %p3921_p3 = scmp.ne.s32.totalorder %s4576_s23, %s3920_s16  ;;  %p3925_p5 = scmp.lt.s32.totalorder %s4576_s23, %s4626_s15 }
0x1339   : > { %p3926_p4 = scmp.lt.s32.totalorder %s3924_s30, %s3920_s16 }
0x133a   : > { %p3922_p1 = pnand %p3921_p3, %p4662_p7 }
0x133b   : > { %p3927_p6 = por %p3926_p4, %p3925_p5 }
0x133c   : > { %p3923_p2 = pneg %p3922_p1 }
0x133e   : > { %p3928_p9 = pnand %p3927_p6, %p3923_p2 }
0x1340   : > { %3931 = shalt.err (!%p3928_p9)
}
0x1341   : > { %3472 = dma.vmem_to_hbm [thread:$0]  (%p4662_p7), %s2893_s20, 16, %s4576_s23, %s2880_s21  }
0x1342 PF: > { %s4663_s27 = sld [smem:[#allocation32_spill]] }
0x1343   : > { %s4664_s6 = sld [smem:[#allocation30_spill]] }
0x1344   : > { %s4665_s3 = sld [smem:[#allocation35_spill]] }
0x1348   : > { %p3534_p13 = scmp.ge.s32.totalorder %s4663_s27, 2 }
0x1349   : > { %s2904_s22 = sand.u32 1, %s4664_s6  }
0x134a   : > { %p4666_p8 = scmp.ne.s32.totalorder %s4665_s3, 0  ;;  %s2905_s18 = scalar_lea.sflag [#allocation6], %s2904_s22 }
0x134c   : > { %p3509_p11 = pnand %p3534_p13, %p4666_p8 }
0x134e   : > { %p3510_p0 = pneg %p3509_p11 }
0x1350   : > { %3973 = dma.done.wait (%p3510_p0), %s2905_s18, 16  }
0x1351   : > { %3975 = vsyncadd (%p3510_p0), %s2905_s18, 4294967280  ;;  %s4667_s21 = sld [smem:[#allocation33_spill]]  ;;  %s4670_s18 = smov %s3982_s19 }
0x1352   : > { %s4668_s25 = sld [smem:[#allocation31_spill]] }
0x1353   : > { %s4669_s20 = sld [smem:[#allocation34_spill]] }
0x1357   : > { %p31_p12 = scmp.ge.s32.totalorder %s4667_s21, 4  }
0x1358   : > { %s4671_s19 = smov %s4668_s25 }
0x1359   :  { %33 = sbr.rel (!%p31_p12) target bundleno = 12 (0xc), region = 160 }
0x135e   :  { %2909 = vsyncpa [#allocation5], 1 }
0x135f   :  { %2911 = vsyncpa [#allocation5 + $0x1], 1 }
0x1360   :  { %2912 = vsyncpa [#allocation8], 1 }
0x1361   :  { %2913 = vsyncpa [#allocation11], 1 }
0x1362   :  { %2914 = vsyncpa [#allocation14], 1 }
0x1363   :  { %2915 = vsyncpa [#allocation17], 1 }
0x1364   :  { %2916 = vsyncpa [#allocation20], 1 }
0x1365   :  { %2917 = vsyncpa [#allocation6], 1 }
0x1366   :  { %2919 = vsyncpa [#allocation6 + $0x1], 1 }

</bundles_post_ra>
